<compile_context>
chip_gen: v7x
topology: tpu7x:2x2x1
jax: 0.10.0
libtpu: 0.0.40
codegen_flags: <defaults>
</compile_context>

<pallas_src>
import math
from functools import partial

import jax
import jax.numpy as jnp
from jax.experimental import pallas as pl
from jax.experimental.pallas import tpu as pltpu

EPS = 1e-6


def _layer_norm(v, g, b):
    mu = jnp.mean(v, axis=-1, keepdims=True)
    var = jnp.mean((v - mu) ** 2, axis=-1, keepdims=True)
    return (v - mu) * jax.lax.rsqrt(var + EPS) * g + b


# ---------------------------- fused Pallas kernel ----------------------------

def _encoder_kernel(num_heads,
                    x_ref, mask_ref, pe_ref,
                    wqkv_ref, bqkv_ref, wo_ref, w1_ref, b1_ref, w2_ref, vecd_ref,
                    lnf_ref, wout_ref, bout_ref,
                    o_ref,
                    x_sc):
    l = pl.program_id(1)
    S, D = x_sc.shape
    H = num_heads
    dh = D // H

    # ---- first layer step: positional-encoding add (emb_dropout = identity) ----
    @pl.when(l == 0)
    def _():
        x_sc[...] = x_ref[0] + pe_ref[...]

    x = x_sc[...]                                   # (S, D) f32 residual stream
    vd = vecd_ref[0]                                # (6, D): g1, b1, g2, b2, b_o, b_ff2
    g1, b1 = vd[0:1], vd[1:2]
    g2, b2 = vd[2:3], vd[3:4]
    b_o, b_ff2 = vd[4:5], vd[5:6]
    mbias = mask_ref[0]                             # (1, S) additive key-mask bias

    # ---------------- pre-LN multi-head self-attention ----------------
    x_norm = _layer_norm(x, g1, b1)
    qkv = jnp.dot(x_norm.astype(jnp.bfloat16), wqkv_ref[0],
                  preferred_element_type=jnp.float32) + bqkv_ref[0]   # (S, 3D) f32
    q = qkv[:, 0:D]                                 # 1/sqrt(dh) folded into wq/bq
    k = qkv[:, D:2 * D]
    v = qkv[:, 2 * D:3 * D]

    # heads -> leading batch dim: single batched MXU stream for scores / PV
    qh = jnp.stack([q[:, h * dh:(h + 1) * dh] for h in range(H)], axis=0)  # (H,S,dh)
    kh = jnp.stack([k[:, h * dh:(h + 1) * dh] for h in range(H)], axis=0)
    vh = jnp.stack([v[:, h * dh:(h + 1) * dh] for h in range(H)], axis=0)

    scores = jnp.einsum('hqd,hkd->hqk',
                        qh.astype(jnp.bfloat16), kh.astype(jnp.bfloat16),
                        preferred_element_type=jnp.float32)           # (H, S, S)
    scores = scores + mbias                         # -1e30 on padded key positions
    scores = scores - jnp.max(scores, axis=-1, keepdims=True)
    p = jnp.exp(scores)
    denom = jnp.sum(p, axis=-1, keepdims=True)      # (H, S, 1)
    ctx = jnp.einsum('hqk,hkd->hqd',
                     p.astype(jnp.bfloat16), vh.astype(jnp.bfloat16),
                     preferred_element_type=jnp.float32)              # (H, S, dh)
    ctx = ctx * pl.reciprocal(denom, approx=True)   # softmax normalize on EUP slot
    ctx2d = jnp.concatenate([ctx[h] for h in range(H)], axis=-1)      # (S, D)

    attn = jnp.dot(ctx2d.astype(jnp.bfloat16), wo_ref[0],
                   preferred_element_type=jnp.float32) + b_o
    h_res = attn + x                                # dropout = identity (eval)

    # ---------------- pre-LN position-wise feed forward ----------------
    h_norm = _layer_norm(h_res, g2, b2)
    ff = jnp.dot(h_norm.astype(jnp.bfloat16), w1_ref[0],
                 preferred_element_type=jnp.float32) + b1_ref[0]
    ff = jnp.maximum(ff, 0.0)
    ff = jnp.dot(ff.astype(jnp.bfloat16), w2_ref[0],
                 preferred_element_type=jnp.float32) + b_ff2
    x_new = ff + h_res
    x_sc[...] = x_new

    # ---- last layer step: final LayerNorm(eps=1e-6) + output Linear ----
    @pl.when(l == pl.num_programs(1) - 1)
    def _():
        lnf = lnf_ref[...]                          # (2, D): gamma, beta
        xn = _layer_norm(x_new, lnf[0:1], lnf[1:2])
        o_ref[0] = (jnp.dot(xn.astype(jnp.bfloat16), wout_ref[...],
                            preferred_element_type=jnp.float32)
                    + bout_ref[...]).astype(o_ref.dtype)


# ---------------------------- wrapper ----------------------------

def transformer_encoder(embed_src, mask, params, num_heads):
    """embed_src: (B, S, D) f32; mask: (B, S) bool (True = valid position)."""
    B, S, D = embed_src.shape
    L, _, FF = params["w_1"].shape

    # additive key-mask bias: 0 for valid keys, -1e30 for padded keys
    mask_bias = ((mask.astype(jnp.float32) - 1.0) * 1e30).reshape(B, 1, S)

    per_layer = [params["w_qkv"], params["b_qkv"], params["w_o"],
                 params["w_1"], params["b_1"], params["w_2"], params["vec_d"]]
    finals = [params["ln_f"], params["w_out"], params["b_out"]]

    def layer_spec(a):
        shp = (1,) + a.shape[1:]
        return pl.BlockSpec(shp, lambda b, l: (l,) + (0,) * (len(shp) - 1))

    def const_spec(a):
        shp = a.shape
        return pl.BlockSpec(shp, lambda b, l: (0,) * len(shp))

    in_specs = (
        [pl.BlockSpec((1, S, D), lambda b, l: (b, 0, 0)),     # embed_src
         pl.BlockSpec((1, 1, S), lambda b, l: (b, 0, 0)),     # mask bias
         const_spec(params["pe"])]                            # positional encoding
        + [layer_spec(a) for a in per_layer]
        + [const_spec(a) for a in finals]
    )

    # explicit VMEM budget: double-buffered blocks + scratch + attention temporaries
    def blk_nbytes(a, leading_one):
        shp = (1,) + a.shape[1:] if leading_one else a.shape
        return int(math.prod(shp)) * a.dtype.itemsize

    blk_bytes = (blk_nbytes(embed_src, True) + blk_nbytes(mask_bias, True)
                 + blk_nbytes(params["pe"], False)
                 + sum(blk_nbytes(a, True) for a in per_layer)
                 + sum(blk_nbytes(a, False) for a in finals)
                 + S * D * 4)                                  # output block
    temps = (num_heads * S * S + S * 3 * D + 2 * S * FF + 6 * S * D) * 4
    vmem_limit = int(min(max(2 * blk_bytes + temps + (2 << 20), 16 << 20), 56 << 20))

    return pl.pallas_call(
        partial(_encoder_kernel, num_heads),
        out_shape=jax.ShapeDtypeStruct((B, S, D), jnp.float32),
        grid_spec=pltpu.PrefetchScalarGridSpec(
            num_scalar_prefetch=0,
            grid=(B, L),
            in_specs=in_specs,
            out_specs=pl.BlockSpec((1, S, D), lambda b, l: (b, 0, 0)),
            scratch_shapes=[pltpu.VMEM((S, D), jnp.float32)]),
        compiler_params=pltpu.CompilerParams(
            dimension_semantics=("parallel", "arbitrary"),
            vmem_limit_bytes=vmem_limit),
    )(embed_src, mask_bias, params["pe"], *per_layer, *finals)


# ---------------------------- parameter init ----------------------------

def _sinusoidal_pe(seq_len, d):
    pos = jnp.arange(seq_len, dtype=jnp.float32)[:, None]
    div = jnp.exp(jnp.arange(0, d, 2, dtype=jnp.float32) * (-math.log(10000.0) / d))
    pe = jnp.zeros((seq_len, d), jnp.float32)
    pe = pe.at[:, 0::2].set(jnp.sin(pos * div))
    pe = pe.at[:, 1::2].set(jnp.cos(pos * div))
    return pe


def init_params(key, d, ff, n_layers, seq_len, num_heads):
    dh = d // num_heads
    scale = 1.0 / math.sqrt(dh)

    def linear(k, fan_in, fan_out):
        w = jax.random.normal(k, (fan_in, fan_out), jnp.float32) * 0.05
        b = jnp.zeros((fan_out,), jnp.float32)
        return w, b

    keys = iter(jax.random.split(key, n_layers * 6 + 1))
    w_qkv, b_qkv, w_o, w_1, b_1, w_2, vec_d = [], [], [], [], [], [], []
    for _ in range(n_layers):
        wq, bq = linear(next(keys), d, d)
        wk, bk = linear(next(keys), d, d)
        wv, bv = linear(next(keys), d, d)
        wo, bo = linear(next(keys), d, d)
        w1, bb1 = linear(next(keys), d, ff)
        w2, bb2 = linear(next(keys), ff, d)
        # fold 1/sqrt(d_head) into the query projection
        w_qkv.append(jnp.concatenate([wq * scale, wk, wv], axis=1))
        b_qkv.append(jnp.concatenate([bq * scale, bk, bv])[None, :])
        w_o.append(wo)
        w_1.append(w1)
        b_1.append(bb1[None, :])
        w_2.append(w2)
        vec_d.append(jnp.stack([jnp.ones((d,), jnp.float32),    # ln1 gamma
                                jnp.zeros((d,), jnp.float32),   # ln1 beta
                                jnp.ones((d,), jnp.float32),    # ln2 gamma
                                jnp.zeros((d,), jnp.float32),   # ln2 beta
                                bo, bb2], axis=0))
    w_out, b_out = linear(next(keys), d, d)
    return dict(
        pe=_sinusoidal_pe(seq_len, d),
        w_qkv=jnp.stack(w_qkv).astype(jnp.bfloat16),   # (L, D, 3D)
        b_qkv=jnp.stack(b_qkv),                        # (L, 1, 3D)
        w_o=jnp.stack(w_o).astype(jnp.bfloat16),       # (L, D, D)
        w_1=jnp.stack(w_1).astype(jnp.bfloat16),       # (L, D, FF)
        b_1=jnp.stack(b_1),                            # (L, 1, FF)
        w_2=jnp.stack(w_2).astype(jnp.bfloat16),       # (L, FF, D)
        vec_d=jnp.stack(vec_d),                        # (L, 6, D)
        ln_f=jnp.stack([jnp.ones((d,), jnp.float32),
                        jnp.zeros((d,), jnp.float32)]),  # (2, D)
        w_out=w_out.astype(jnp.bfloat16),              # (D, D)
        b_out=b_out[None, :])                          # (1, D)


# ---------------------------- demo ----------------------------

if __name__ == "__main__":
    B, S, D, FF, H, L = 2, 8, 32, 64, 4, 2   # encoder_dim=32, ff=64, nhead=4, layers=2
    key = jax.random.PRNGKey(0)
    k_x, k_p = jax.random.split(key)
    embed_src = jax.random.normal(k_x, (B, S, D), jnp.float32)
    mask = jnp.ones((B, S), dtype=jnp.bool_).at[1, 6:].set(False)  # pad last 2 of batch 1
    params = init_params(k_p, D, FF, L, S, H)

    out = transformer_encoder(embed_src, mask, params, num_heads=H)
    jax.block_until_ready(out)
    assert out.shape == (B, S, D) and out.dtype == jnp.float32
    assert bool(jnp.all(jnp.isfinite(out)))
    print("KERNEL_OK")
</pallas_src>

<mosaic_0001>
module attributes {stable_mosaic.version = 11 : i64} {
  func.func @_encoder_kernel(%arg0: i32, %arg1: i32, %arg2: memref<1x8x32xf32, #tpu.memory_space<vmem>>, %arg3: memref<1x1x8xf32, #tpu.memory_space<vmem>>, %arg4: memref<8x32xf32, #tpu.memory_space<vmem>>, %arg5: memref<1x32x96xbf16, #tpu.memory_space<vmem>>, %arg6: memref<1x1x96xf32, #tpu.memory_space<vmem>>, %arg7: memref<1x32x32xbf16, #tpu.memory_space<vmem>>, %arg8: memref<1x32x64xbf16, #tpu.memory_space<vmem>>, %arg9: memref<1x1x64xf32, #tpu.memory_space<vmem>>, %arg10: memref<1x64x32xbf16, #tpu.memory_space<vmem>>, %arg11: memref<1x6x32xf32, #tpu.memory_space<vmem>>, %arg12: memref<2x32xf32, #tpu.memory_space<vmem>>, %arg13: memref<32x32xbf16, #tpu.memory_space<vmem>>, %arg14: memref<1x32xf32, #tpu.memory_space<vmem>>, %arg15: memref<1x8x32xf32, #tpu.memory_space<vmem>>, %arg16: memref<8x32xf32, #tpu.memory_space<vmem>>) attributes {dimension_semantics = [#tpu.dimension_semantics<parallel>, #tpu.dimension_semantics<arbitrary>], iteration_bounds = array<i64: 2, 2>, scalar_prefetch = 0 : i64, scratch_operands = 1 : i64, tpu.core_type = #tpu.core_type<tc>, window_params = [{transform_indices = @transform_0, window_bounds = array<i64: 1, 8, 32>}, {transform_indices = @transform_1, window_bounds = array<i64: 1, 1, 8>}, {pipeline_mode = #tpu.pipeline_mode<synchronous>, transform_indices = @transform_2, window_bounds = array<i64: 8, 32>}, {transform_indices = @transform_3, window_bounds = array<i64: 1, 32, 96>}, {transform_indices = @transform_4, window_bounds = array<i64: 1, 1, 96>}, {transform_indices = @transform_5, window_bounds = array<i64: 1, 32, 32>}, {transform_indices = @transform_6, window_bounds = array<i64: 1, 32, 64>}, {transform_indices = @transform_7, window_bounds = array<i64: 1, 1, 64>}, {transform_indices = @transform_8, window_bounds = array<i64: 1, 64, 32>}, {transform_indices = @transform_9, window_bounds = array<i64: 1, 6, 32>}, {pipeline_mode = #tpu.pipeline_mode<synchronous>, transform_indices = @transform_10, window_bounds = array<i64: 2, 32>}, {pipeline_mode = #tpu.pipeline_mode<synchronous>, transform_indices = @transform_11, window_bounds = array<i64: 32, 32>}, {pipeline_mode = #tpu.pipeline_mode<synchronous>, transform_indices = @transform_12, window_bounds = array<i64: 1, 32>}, {transform_indices = @transform_13, window_bounds = array<i64: 1, 8, 32>}]} {
    %c0_i32 = arith.constant 0 : i32
    %0 = arith.cmpi eq, %arg1, %c0_i32 : i32
    %1 = arith.extui %0 : i1 to i32
    %c0_i32_0 = arith.constant 0 : i32
    %2 = arith.cmpi ne, %1, %c0_i32_0 : i32
    scf.if %2 {
      %c0_47 = arith.constant 0 : index
      %c0_48 = arith.constant 0 : index
      %c0_49 = arith.constant 0 : index
      %152 = vector.load %arg2[%c0_47, %c0_48, %c0_49] : memref<1x8x32xf32, #tpu.memory_space<vmem>>, vector<1x8x32xf32>
      %153 = vector.shape_cast %152 : vector<1x8x32xf32> to vector<8x32xf32>
      %c0_50 = arith.constant 0 : index
      %c0_51 = arith.constant 0 : index
      %154 = vector.load %arg4[%c0_50, %c0_51] : memref<8x32xf32, #tpu.memory_space<vmem>>, vector<8x32xf32>
      %155 = arith.addf %153, %154 : vector<8x32xf32>
      %c0_52 = arith.constant 0 : index
      %c0_53 = arith.constant 0 : index
      %156 = vector.load %arg16[%c0_52, %c0_53] : memref<8x32xf32, #tpu.memory_space<vmem>>, vector<8x32xf32>
      tpu.vector_store %arg16[%c0_52, %c0_53], %155 {strides = array<i32>} : memref<8x32xf32, #tpu.memory_space<vmem>>, vector<8x32xf32>,
    } else {
    }
    %c0 = arith.constant 0 : index
    %c0_1 = arith.constant 0 : index
    %3 = vector.load %arg16[%c0, %c0_1] : memref<8x32xf32, #tpu.memory_space<vmem>>, vector<8x32xf32>
    %c0_2 = arith.constant 0 : index
    %c0_3 = arith.constant 0 : index
    %c0_4 = arith.constant 0 : index
    %4 = vector.load %arg11[%c0_2, %c0_3, %c0_4] : memref<1x6x32xf32, #tpu.memory_space<vmem>>, vector<1x6x32xf32>
    %5 = vector.shape_cast %4 : vector<1x6x32xf32> to vector<6x32xf32>
    %6 = vector.extract_strided_slice %5 {offsets = [0, 0], sizes = [1, 32], strides = [1, 1]} : vector<6x32xf32> to vector<1x32xf32>
    %7 = vector.extract_strided_slice %5 {offsets = [1, 0], sizes = [1, 32], strides = [1, 1]} : vector<6x32xf32> to vector<1x32xf32>
    %8 = vector.extract_strided_slice %5 {offsets = [2, 0], sizes = [1, 32], strides = [1, 1]} : vector<6x32xf32> to vector<1x32xf32>
    %9 = vector.extract_strided_slice %5 {offsets = [3, 0], sizes = [1, 32], strides = [1, 1]} : vector<6x32xf32> to vector<1x32xf32>
    %10 = vector.extract_strided_slice %5 {offsets = [4, 0], sizes = [1, 32], strides = [1, 1]} : vector<6x32xf32> to vector<1x32xf32>
    %11 = vector.extract_strided_slice %5 {offsets = [5, 0], sizes = [1, 32], strides = [1, 1]} : vector<6x32xf32> to vector<1x32xf32>
    %c0_5 = arith.constant 0 : index
    %c0_6 = arith.constant 0 : index
    %c0_7 = arith.constant 0 : index
    %12 = vector.load %arg3[%c0_5, %c0_6, %c0_7] : memref<1x1x8xf32, #tpu.memory_space<vmem>>, vector<1x1x8xf32>
    %13 = vector.shape_cast %12 : vector<1x1x8xf32> to vector<1x8xf32>
    %cst = arith.constant dense<0.000000e+00> : vector<8xf32>
    %14 = vector.multi_reduction <add>, %3, %cst [1] : vector<8x32xf32> to vector<8xf32>
    %15 = vector.shape_cast %14 : vector<8xf32> to vector<8x1xf32>
    %cst_8 = arith.constant 3.200000e+01 : f32
    %16 = vector.broadcast %cst_8 : f32 to vector<8x1xf32>
    %17 = arith.divf %15, %16 : vector<8x1xf32>
    %18 = vector.broadcast %17 : vector<8x1xf32> to vector<8x32xf32>
    %19 = arith.subf %3, %18 : vector<8x32xf32>
    %20 = arith.mulf %19, %19 : vector<8x32xf32>
    %cst_9 = arith.constant dense<0.000000e+00> : vector<8xf32>
    %21 = vector.multi_reduction <add>, %20, %cst_9 [1] : vector<8x32xf32> to vector<8xf32>
    %22 = vector.shape_cast %21 : vector<8xf32> to vector<8x1xf32>
    %cst_10 = arith.constant 3.200000e+01 : f32
    %23 = vector.broadcast %cst_10 : f32 to vector<8x1xf32>
    %24 = arith.divf %22, %23 : vector<8x1xf32>
    %25 = vector.broadcast %17 : vector<8x1xf32> to vector<8x32xf32>
    %26 = arith.subf %3, %25 : vector<8x32xf32>
    %cst_11 = arith.constant 9.99999997E-7 : f32
    %27 = vector.broadcast %cst_11 : f32 to vector<8x1xf32>
    %28 = arith.addf %24, %27 : vector<8x1xf32>
    %29 = math.rsqrt %28 : vector<8x1xf32>
    %30 = vector.broadcast %29 : vector<8x1xf32> to vector<8x32xf32>
    %31 = arith.mulf %26, %30 : vector<8x32xf32>
    %32 = vector.broadcast %6 : vector<1x32xf32> to vector<8x32xf32>
    %33 = arith.mulf %31, %32 : vector<8x32xf32>
    %34 = vector.broadcast %7 : vector<1x32xf32> to vector<8x32xf32>
    %35 = arith.addf %33, %34 : vector<8x32xf32>
    %36 = arith.truncf %35 : vector<8x32xf32> to vector<8x32xbf16>
    %c0_12 = arith.constant 0 : index
    %c0_13 = arith.constant 0 : index
    %c0_14 = arith.constant 0 : index
    %37 = vector.load %arg5[%c0_12, %c0_13, %c0_14] : memref<1x32x96xbf16, #tpu.memory_space<vmem>>, vector<1x32x96xbf16>
    %38 = vector.shape_cast %37 : vector<1x32x96xbf16> to vector<32x96xbf16>
    %cst_15 = arith.constant dense<0.000000e+00> : vector<8x96xf32>
    %39 = tpu.matmul %36, %38, %cst_15 {dimension_numbers = #tpu.dot_dimension_numbers<[1], [0], [0], [1], [0, 0, 1, 1], [], []>} : vector<8x32xbf16>, vector<32x96xbf16>, vector<8x96xf32> -> vector<8x96xf32>
    %c0_16 = arith.constant 0 : index
    %c0_17 = arith.constant 0 : index
    %c0_18 = arith.constant 0 : index
    %40 = vector.load %arg6[%c0_16, %c0_17, %c0_18] : memref<1x1x96xf32, #tpu.memory_space<vmem>>, vector<1x1x96xf32>
    %41 = vector.shape_cast %40 : vector<1x1x96xf32> to vector<1x96xf32>
    %42 = vector.broadcast %41 : vector<1x96xf32> to vector<8x96xf32>
    %43 = arith.addf %39, %42 : vector<8x96xf32>
    %44 = vector.extract_strided_slice %43 {offsets = [0, 0], sizes = [8, 32], strides = [1, 1]} : vector<8x96xf32> to vector<8x32xf32>
    %45 = vector.extract_strided_slice %43 {offsets = [0, 32], sizes = [8, 32], strides = [1, 1]} : vector<8x96xf32> to vector<8x32xf32>
    %46 = vector.extract_strided_slice %43 {offsets = [0, 64], sizes = [8, 32], strides = [1, 1]} : vector<8x96xf32> to vector<8x32xf32>
    %47 = vector.extract_strided_slice %44 {offsets = [0, 0], sizes = [8, 8], strides = [1, 1]} : vector<8x32xf32> to vector<8x8xf32>
    %48 = vector.extract_strided_slice %44 {offsets = [0, 8], sizes = [8, 8], strides = [1, 1]} : vector<8x32xf32> to vector<8x8xf32>
    %49 = vector.extract_strided_slice %44 {offsets = [0, 16], sizes = [8, 8], strides = [1, 1]} : vector<8x32xf32> to vector<8x8xf32>
    %50 = vector.extract_strided_slice %44 {offsets = [0, 24], sizes = [8, 8], strides = [1, 1]} : vector<8x32xf32> to vector<8x8xf32>
    %51 = vector.shape_cast %47 : vector<8x8xf32> to vector<1x8x8xf32>
    %52 = vector.shape_cast %48 : vector<8x8xf32> to vector<1x8x8xf32>
    %53 = vector.shape_cast %49 : vector<8x8xf32> to vector<1x8x8xf32>
    %54 = vector.shape_cast %50 : vector<8x8xf32> to vector<1x8x8xf32>
    %55 = tpu.concatenate %51, %52, %53, %54 in 0 : vector<1x8x8xf32>, vector<1x8x8xf32>, vector<1x8x8xf32>, vector<1x8x8xf32> -> vector<4x8x8xf32>
    %56 = vector.extract_strided_slice %45 {offsets = [0, 0], sizes = [8, 8], strides = [1, 1]} : vector<8x32xf32> to vector<8x8xf32>
    %57 = vector.extract_strided_slice %45 {offsets = [0, 8], sizes = [8, 8], strides = [1, 1]} : vector<8x32xf32> to vector<8x8xf32>
    %58 = vector.extract_strided_slice %45 {offsets = [0, 16], sizes = [8, 8], strides = [1, 1]} : vector<8x32xf32> to vector<8x8xf32>
    %59 = vector.extract_strided_slice %45 {offsets = [0, 24], sizes = [8, 8], strides = [1, 1]} : vector<8x32xf32> to vector<8x8xf32>
    %60 = vector.shape_cast %56 : vector<8x8xf32> to vector<1x8x8xf32>
    %61 = vector.shape_cast %57 : vector<8x8xf32> to vector<1x8x8xf32>
    %62 = vector.shape_cast %58 : vector<8x8xf32> to vector<1x8x8xf32>
    %63 = vector.shape_cast %59 : vector<8x8xf32> to vector<1x8x8xf32>
    %64 = tpu.concatenate %60, %61, %62, %63 in 0 : vector<1x8x8xf32>, vector<1x8x8xf32>, vector<1x8x8xf32>, vector<1x8x8xf32> -> vector<4x8x8xf32>
    %65 = vector.extract_strided_slice %46 {offsets = [0, 0], sizes = [8, 8], strides = [1, 1]} : vector<8x32xf32> to vector<8x8xf32>
    %66 = vector.extract_strided_slice %46 {offsets = [0, 8], sizes = [8, 8], strides = [1, 1]} : vector<8x32xf32> to vector<8x8xf32>
    %67 = vector.extract_strided_slice %46 {offsets = [0, 16], sizes = [8, 8], strides = [1, 1]} : vector<8x32xf32> to vector<8x8xf32>
    %68 = vector.extract_strided_slice %46 {offsets = [0, 24], sizes = [8, 8], strides = [1, 1]} : vector<8x32xf32> to vector<8x8xf32>
    %69 = vector.shape_cast %65 : vector<8x8xf32> to vector<1x8x8xf32>
    %70 = vector.shape_cast %66 : vector<8x8xf32> to vector<1x8x8xf32>
    %71 = vector.shape_cast %67 : vector<8x8xf32> to vector<1x8x8xf32>
    %72 = vector.shape_cast %68 : vector<8x8xf32> to vector<1x8x8xf32>
    %73 = tpu.concatenate %69, %70, %71, %72 in 0 : vector<1x8x8xf32>, vector<1x8x8xf32>, vector<1x8x8xf32>, vector<1x8x8xf32> -> vector<4x8x8xf32>
    %74 = arith.truncf %55 : vector<4x8x8xf32> to vector<4x8x8xbf16>
    %75 = arith.truncf %64 : vector<4x8x8xf32> to vector<4x8x8xbf16>
    "tpu.trace_start"() <{level = 10 : i32, message = "hqd,hkd->hqk"}> : () -> ()
    %cst_19 = arith.constant dense<0.000000e+00> : vector<4x8x8xf32>
    %76 = tpu.matmul %74, %75, %cst_19 {dimension_numbers = #tpu.dot_dimension_numbers<[2], [2], [1], [1], [0, 0, 0, 1, 1, 1], [0], [0]>} : vector<4x8x8xbf16>, vector<4x8x8xbf16>, vector<4x8x8xf32> -> vector<4x8x8xf32>
    "tpu.trace_stop"() : () -> ()
    %77 = vector.shape_cast %13 : vector<1x8xf32> to vector<1x1x8xf32>
    %78 = vector.broadcast %77 : vector<1x1x8xf32> to vector<4x8x8xf32>
    %79 = arith.addf %76, %78 : vector<4x8x8xf32>
    %cst_20 = arith.constant dense<0xFF800000> : vector<4x8xf32>
    %80 = vector.multi_reduction <maximumf>, %79, %cst_20 [2] : vector<4x8x8xf32> to vector<4x8xf32>
    %81 = vector.shape_cast %80 : vector<4x8xf32> to vector<4x8x1xf32>
    %82 = vector.broadcast %81 : vector<4x8x1xf32> to vector<4x8x8xf32>
    %83 = arith.subf %79, %82 : vector<4x8x8xf32>
    %84 = math.exp %83 : vector<4x8x8xf32>
    %cst_21 = arith.constant dense<0.000000e+00> : vector<4x8xf32>
    %85 = vector.multi_reduction <add>, %84, %cst_21 [2] : vector<4x8x8xf32> to vector<4x8xf32>
    %86 = vector.shape_cast %85 : vector<4x8xf32> to vector<4x8x1xf32>
    %87 = arith.truncf %84 : vector<4x8x8xf32> to vector<4x8x8xbf16>
    %88 = arith.truncf %73 : vector<4x8x8xf32> to vector<4x8x8xbf16>
    "tpu.trace_start"() <{level = 10 : i32, message = "hqk,hkd->hqd"}> : () -> ()
    %cst_22 = arith.constant dense<0.000000e+00> : vector<4x8x8xf32>
    %89 = tpu.matmul %87, %88, %cst_22 {dimension_numbers = #tpu.dot_dimension_numbers<[2], [1], [1], [2], [0, 0, 0, 1, 1, 2], [0], [0]>} : vector<4x8x8xbf16>, vector<4x8x8xbf16>, vector<4x8x8xf32> -> vector<4x8x8xf32>
    "tpu.trace_stop"() : () -> ()
    %90 = tpu.reciprocal %86 {approx = true} : vector<4x8x1xf32> -> vector<4x8x1xf32>
    %91 = vector.broadcast %90 : vector<4x8x1xf32> to vector<4x8x8xf32>
    %92 = arith.mulf %89, %91 : vector<4x8x8xf32>
    %93 = vector.extract_strided_slice %92 {offsets = [0, 0, 0], sizes = [1, 8, 8], strides = [1, 1, 1]} : vector<4x8x8xf32> to vector<1x8x8xf32>
    %94 = vector.shape_cast %93 : vector<1x8x8xf32> to vector<8x8xf32>
    %95 = vector.extract_strided_slice %92 {offsets = [1, 0, 0], sizes = [1, 8, 8], strides = [1, 1, 1]} : vector<4x8x8xf32> to vector<1x8x8xf32>
    %96 = vector.shape_cast %95 : vector<1x8x8xf32> to vector<8x8xf32>
    %97 = vector.extract_strided_slice %92 {offsets = [2, 0, 0], sizes = [1, 8, 8], strides = [1, 1, 1]} : vector<4x8x8xf32> to vector<1x8x8xf32>
    %98 = vector.shape_cast %97 : vector<1x8x8xf32> to vector<8x8xf32>
    %99 = vector.extract_strided_slice %92 {offsets = [3, 0, 0], sizes = [1, 8, 8], strides = [1, 1, 1]} : vector<4x8x8xf32> to vector<1x8x8xf32>
    %100 = vector.shape_cast %99 : vector<1x8x8xf32> to vector<8x8xf32>
    %101 = tpu.concatenate %94, %96, %98, %100 in 1 : vector<8x8xf32>, vector<8x8xf32>, vector<8x8xf32>, vector<8x8xf32> -> vector<8x32xf32>
    %102 = arith.truncf %101 : vector<8x32xf32> to vector<8x32xbf16>
    %c0_23 = arith.constant 0 : index
    %c0_24 = arith.constant 0 : index
    %c0_25 = arith.constant 0 : index
    %103 = vector.load %arg7[%c0_23, %c0_24, %c0_25] : memref<1x32x32xbf16, #tpu.memory_space<vmem>>, vector<1x32x32xbf16>
    %104 = vector.shape_cast %103 : vector<1x32x32xbf16> to vector<32x32xbf16>
    %cst_26 = arith.constant dense<0.000000e+00> : vector<8x32xf32>
    %105 = tpu.matmul %102, %104, %cst_26 {dimension_numbers = #tpu.dot_dimension_numbers<[1], [0], [0], [1], [0, 0, 1, 1], [], []>} : vector<8x32xbf16>, vector<32x32xbf16>, vector<8x32xf32> -> vector<8x32xf32>
    %106 = vector.broadcast %10 : vector<1x32xf32> to vector<8x32xf32>
    %107 = arith.addf %105, %106 : vector<8x32xf32>
    %108 = arith.addf %107, %3 : vector<8x32xf32>
    %cst_27 = arith.constant dense<0.000000e+00> : vector<8xf32>
    %109 = vector.multi_reduction <add>, %108, %cst_27 [1] : vector<8x32xf32> to vector<8xf32>
    %110 = vector.shape_cast %109 : vector<8xf32> to vector<8x1xf32>
    %cst_28 = arith.constant 3.200000e+01 : f32
    %111 = vector.broadcast %cst_28 : f32 to vector<8x1xf32>
    %112 = arith.divf %110, %111 : vector<8x1xf32>
    %113 = vector.broadcast %112 : vector<8x1xf32> to vector<8x32xf32>
    %114 = arith.subf %108, %113 : vector<8x32xf32>
    %115 = arith.mulf %114, %114 : vector<8x32xf32>
    %cst_29 = arith.constant dense<0.000000e+00> : vector<8xf32>
    %116 = vector.multi_reduction <add>, %115, %cst_29 [1] : vector<8x32xf32> to vector<8xf32>
    %117 = vector.shape_cast %116 : vector<8xf32> to vector<8x1xf32>
    %cst_30 = arith.constant 3.200000e+01 : f32
    %118 = vector.broadcast %cst_30 : f32 to vector<8x1xf32>
    %119 = arith.divf %117, %118 : vector<8x1xf32>
    %120 = vector.broadcast %112 : vector<8x1xf32> to vector<8x32xf32>
    %121 = arith.subf %108, %120 : vector<8x32xf32>
    %cst_31 = arith.constant 9.99999997E-7 : f32
    %122 = vector.broadcast %cst_31 : f32 to vector<8x1xf32>
    %123 = arith.addf %119, %122 : vector<8x1xf32>
    %124 = math.rsqrt %123 : vector<8x1xf32>
    %125 = vector.broadcast %124 : vector<8x1xf32> to vector<8x32xf32>
    %126 = arith.mulf %121, %125 : vector<8x32xf32>
    %127 = vector.broadcast %8 : vector<1x32xf32> to vector<8x32xf32>
    %128 = arith.mulf %126, %127 : vector<8x32xf32>
    %129 = vector.broadcast %9 : vector<1x32xf32> to vector<8x32xf32>
    %130 = arith.addf %128, %129 : vector<8x32xf32>
    %131 = arith.truncf %130 : vector<8x32xf32> to vector<8x32xbf16>
    %c0_32 = arith.constant 0 : index
    %c0_33 = arith.constant 0 : index
    %c0_34 = arith.constant 0 : index
    %132 = vector.load %arg8[%c0_32, %c0_33, %c0_34] : memref<1x32x64xbf16, #tpu.memory_space<vmem>>, vector<1x32x64xbf16>
    %133 = vector.shape_cast %132 : vector<1x32x64xbf16> to vector<32x64xbf16>
    %cst_35 = arith.constant dense<0.000000e+00> : vector<8x64xf32>
    %134 = tpu.matmul %131, %133, %cst_35 {dimension_numbers = #tpu.dot_dimension_numbers<[1], [0], [0], [1], [0, 0, 1, 1], [], []>} : vector<8x32xbf16>, vector<32x64xbf16>, vector<8x64xf32> -> vector<8x64xf32>
    %c0_36 = arith.constant 0 : index
    %c0_37 = arith.constant 0 : index
    %c0_38 = arith.constant 0 : index
    %135 = vector.load %arg9[%c0_36, %c0_37, %c0_38] : memref<1x1x64xf32, #tpu.memory_space<vmem>>, vector<1x1x64xf32>
    %136 = vector.shape_cast %135 : vector<1x1x64xf32> to vector<1x64xf32>
    %137 = vector.broadcast %136 : vector<1x64xf32> to vector<8x64xf32>
    %138 = arith.addf %134, %137 : vector<8x64xf32>
    %cst_39 = arith.constant 0.000000e+00 : f32
    %139 = vector.broadcast %cst_39 : f32 to vector<8x64xf32>
    %140 = arith.maximumf %138, %139 : vector<8x64xf32>
    %141 = arith.truncf %140 : vector<8x64xf32> to vector<8x64xbf16>
    %c0_40 = arith.constant 0 : index
    %c0_41 = arith.constant 0 : index
    %c0_42 = arith.constant 0 : index
    %142 = vector.load %arg10[%c0_40, %c0_41, %c0_42] : memref<1x64x32xbf16, #tpu.memory_space<vmem>>, vector<1x64x32xbf16>
    %143 = vector.shape_cast %142 : vector<1x64x32xbf16> to vector<64x32xbf16>
    %cst_43 = arith.constant dense<0.000000e+00> : vector<8x32xf32>
    %144 = tpu.matmul %141, %143, %cst_43 {dimension_numbers = #tpu.dot_dimension_numbers<[1], [0], [0], [1], [0, 0, 1, 1], [], []>} : vector<8x64xbf16>, vector<64x32xbf16>, vector<8x32xf32> -> vector<8x32xf32>
    %145 = vector.broadcast %11 : vector<1x32xf32> to vector<8x32xf32>
    %146 = arith.addf %144, %145 : vector<8x32xf32>
    %147 = arith.addf %146, %108 : vector<8x32xf32>
    %c0_44 = arith.constant 0 : index
    %c0_45 = arith.constant 0 : index
    %148 = vector.load %arg16[%c0_44, %c0_45] : memref<8x32xf32, #tpu.memory_space<vmem>>, vector<8x32xf32>
    tpu.vector_store %arg16[%c0_44, %c0_45], %147 {strides = array<i32>} : memref<8x32xf32, #tpu.memory_space<vmem>>, vector<8x32xf32>,
    %c1_i32 = arith.constant 1 : i32
    %149 = arith.cmpi eq, %arg1, %c1_i32 : i32
    %150 = arith.extui %149 : i1 to i32
    %c0_i32_46 = arith.constant 0 : i32
    %151 = arith.cmpi ne, %150, %c0_i32_46 : i32
    scf.if %151 {
      %c0_47 = arith.constant 0 : index
      %c0_48 = arith.constant 0 : index
      %152 = vector.load %arg12[%c0_47, %c0_48] : memref<2x32xf32, #tpu.memory_space<vmem>>, vector<2x32xf32>
      %153 = vector.extract_strided_slice %152 {offsets = [0, 0], sizes = [1, 32], strides = [1, 1]} : vector<2x32xf32> to vector<1x32xf32>
      %154 = vector.extract_strided_slice %152 {offsets = [1, 0], sizes = [1, 32], strides = [1, 1]} : vector<2x32xf32> to vector<1x32xf32>
      %cst_49 = arith.constant dense<0.000000e+00> : vector<8xf32>
      %155 = vector.multi_reduction <add>, %147, %cst_49 [1] : vector<8x32xf32> to vector<8xf32>
      %156 = vector.shape_cast %155 : vector<8xf32> to vector<8x1xf32>
      %cst_50 = arith.constant 3.200000e+01 : f32
      %157 = vector.broadcast %cst_50 : f32 to vector<8x1xf32>
      %158 = arith.divf %156, %157 : vector<8x1xf32>
      %159 = vector.broadcast %158 : vector<8x1xf32> to vector<8x32xf32>
      %160 = arith.subf %147, %159 : vector<8x32xf32>
      %161 = arith.mulf %160, %160 : vector<8x32xf32>
      %cst_51 = arith.constant dense<0.000000e+00> : vector<8xf32>
      %162 = vector.multi_reduction <add>, %161, %cst_51 [1] : vector<8x32xf32> to vector<8xf32>
      %163 = vector.shape_cast %162 : vector<8xf32> to vector<8x1xf32>
      %cst_52 = arith.constant 3.200000e+01 : f32
      %164 = vector.broadcast %cst_52 : f32 to vector<8x1xf32>
      %165 = arith.divf %163, %164 : vector<8x1xf32>
      %166 = vector.broadcast %158 : vector<8x1xf32> to vector<8x32xf32>
      %167 = arith.subf %147, %166 : vector<8x32xf32>
      %cst_53 = arith.constant 9.99999997E-7 : f32
      %168 = vector.broadcast %cst_53 : f32 to vector<8x1xf32>
      %169 = arith.addf %165, %168 : vector<8x1xf32>
      %170 = math.rsqrt %169 : vector<8x1xf32>
      %171 = vector.broadcast %170 : vector<8x1xf32> to vector<8x32xf32>
      %172 = arith.mulf %167, %171 : vector<8x32xf32>
      %173 = vector.broadcast %153 : vector<1x32xf32> to vector<8x32xf32>
      %174 = arith.mulf %172, %173 : vector<8x32xf32>
      %175 = vector.broadcast %154 : vector<1x32xf32> to vector<8x32xf32>
      %176 = arith.addf %174, %175 : vector<8x32xf32>
      %177 = arith.truncf %176 : vector<8x32xf32> to vector<8x32xbf16>
      %c0_54 = arith.constant 0 : index
      %c0_55 = arith.constant 0 : index
      %178 = vector.load %arg13[%c0_54, %c0_55] : memref<32x32xbf16, #tpu.memory_space<vmem>>, vector<32x32xbf16>
      %cst_56 = arith.constant dense<0.000000e+00> : vector<8x32xf32>
      %179 = tpu.matmul %177, %178, %cst_56 {dimension_numbers = #tpu.dot_dimension_numbers<[1], [0], [0], [1], [0, 0, 1, 1], [], []>} : vector<8x32xbf16>, vector<32x32xbf16>, vector<8x32xf32> -> vector<8x32xf32>
      %c0_57 = arith.constant 0 : index
      %c0_58 = arith.constant 0 : index
      %180 = vector.load %arg14[%c0_57, %c0_58] : memref<1x32xf32, #tpu.memory_space<vmem>>, vector<1x32xf32>
      %181 = vector.broadcast %180 : vector<1x32xf32> to vector<8x32xf32>
      %182 = arith.addf %179, %181 : vector<8x32xf32>
      %c0_59 = arith.constant 0 : index
      %c0_60 = arith.constant 0 : index
      %c0_61 = arith.constant 0 : index
      %183 = vector.load %arg15[%c0_59, %c0_60, %c0_61] : memref<1x8x32xf32, #tpu.memory_space<vmem>>, vector<1x8x32xf32>
      %184 = vector.shape_cast %183 : vector<1x8x32xf32> to vector<8x32xf32>
      %185 = vector.shape_cast %182 : vector<8x32xf32> to vector<1x8x32xf32>
      tpu.vector_store %arg15[%c0_59, %c0_60, %c0_61], %185 {strides = array<i32>} : memref<1x8x32xf32, #tpu.memory_space<vmem>>, vector<1x8x32xf32>,
    } else {
    }
    return
  }
  func.func @transform_0(%arg0: i32, %arg1: i32) -> (i32, i32, i32) {
    %c0_i32 = arith.constant 0 : i32
    %c0_i32_0 = arith.constant 0 : i32
    %c0_i32_1 = arith.constant 0 : i32
    return %arg0, %c0_i32, %c0_i32_0 : i32, i32, i32
  }
  func.func @transform_1(%arg0: i32, %arg1: i32) -> (i32, i32, i32) {
    %c0_i32 = arith.constant 0 : i32
    %c0_i32_0 = arith.constant 0 : i32
    %c0_i32_1 = arith.constant 0 : i32
    return %arg0, %c0_i32, %c0_i32_0 : i32, i32, i32
  }
  func.func @transform_2(%arg0: i32, %arg1: i32) -> (i32, i32) {
    %c0_i32 = arith.constant 0 : i32
    %c0_i32_0 = arith.constant 0 : i32
    %c0_i32_1 = arith.constant 0 : i32
    return %c0_i32, %c0_i32_0 : i32, i32
  }
  func.func @transform_3(%arg0: i32, %arg1: i32) -> (i32, i32, i32) {
    %c0_i32 = arith.constant 0 : i32
    %c0_i32_0 = arith.constant 0 : i32
    %c0_i32_1 = arith.constant 0 : i32
    return %arg1, %c0_i32, %c0_i32_0 : i32, i32, i32
  }
  func.func @transform_4(%arg0: i32, %arg1: i32) -> (i32, i32, i32) {
    %c0_i32 = arith.constant 0 : i32
    %c0_i32_0 = arith.constant 0 : i32
    %c0_i32_1 = arith.constant 0 : i32
    return %arg1, %c0_i32, %c0_i32_0 : i32, i32, i32
  }
  func.func @transform_5(%arg0: i32, %arg1: i32) -> (i32, i32, i32) {
    %c0_i32 = arith.constant 0 : i32
    %c0_i32_0 = arith.constant 0 : i32
    %c0_i32_1 = arith.constant 0 : i32
    return %arg1, %c0_i32, %c0_i32_0 : i32, i32, i32
  }
  func.func @transform_6(%arg0: i32, %arg1: i32) -> (i32, i32, i32) {
    %c0_i32 = arith.constant 0 : i32
    %c0_i32_0 = arith.constant 0 : i32
    %c0_i32_1 = arith.constant 0 : i32
    return %arg1, %c0_i32, %c0_i32_0 : i32, i32, i32
  }
  func.func @transform_7(%arg0: i32, %arg1: i32) -> (i32, i32, i32) {
    %c0_i32 = arith.constant 0 : i32
    %c0_i32_0 = arith.constant 0 : i32
    %c0_i32_1 = arith.constant 0 : i32
    return %arg1, %c0_i32, %c0_i32_0 : i32, i32, i32
  }
  func.func @transform_8(%arg0: i32, %arg1: i32) -> (i32, i32, i32) {
    %c0_i32 = arith.constant 0 : i32
    %c0_i32_0 = arith.constant 0 : i32
    %c0_i32_1 = arith.constant 0 : i32
    return %arg1, %c0_i32, %c0_i32_0 : i32, i32, i32
  }
  func.func @transform_9(%arg0: i32, %arg1: i32) -> (i32, i32, i32) {
    %c0_i32 = arith.constant 0 : i32
    %c0_i32_0 = arith.constant 0 : i32
    %c0_i32_1 = arith.constant 0 : i32
    return %arg1, %c0_i32, %c0_i32_0 : i32, i32, i32
  }
  func.func @transform_10(%arg0: i32, %arg1: i32) -> (i32, i32) {
    %c0_i32 = arith.constant 0 : i32
    %c0_i32_0 = arith.constant 0 : i32
    %c0_i32_1 = arith.constant 0 : i32
    return %c0_i32, %c0_i32_0 : i32, i32
  }
  func.func @transform_11(%arg0: i32, %arg1: i32) -> (i32, i32) {
    %c0_i32 = arith.constant 0 : i32
    %c0_i32_0 = arith.constant 0 : i32
    %c0_i32_1 = arith.constant 0 : i32
    return %c0_i32, %c0_i32_0 : i32, i32
  }
  func.func @transform_12(%arg0: i32, %arg1: i32) -> (i32, i32) {
    %c0_i32 = arith.constant 0 : i32
    %c0_i32_0 = arith.constant 0 : i32
    %c0_i32_1 = arith.constant 0 : i32
    return %c0_i32, %c0_i32_0 : i32, i32
  }
  func.func @transform_13(%arg0: i32, %arg1: i32) -> (i32, i32, i32) {
    %c0_i32 = arith.constant 0 : i32
    %c0_i32_0 = arith.constant 0 : i32
    %c0_i32_1 = arith.constant 0 : i32
    return %arg0, %c0_i32, %c0_i32_0 : i32, i32, i32
  }
}

</mosaic_0001>

<bundles_post_ra>
// kernel: tpu_custom_call.1
= control target key start
LH: loop header
LB: loop body
LE: loop exit
PB: predicated region body
PF: predicated region fallthrough
CT: control target
= control target key end

     0   :  { %s3119_s0 = inlined_call_operand.vmem [shape: f32[2,8,32], index: 0, kind: input, shape index: {}]   ;;  %s3120_s1 = inlined_call_operand.hbm [shape: f32[2,1,8], index: 1, kind: input, shape index: {}]   ;;  %s3121_s2 = inlined_call_operand.hbm [shape: f32[8,32], index: 2, kind: input, shape index: {}]   ;;  %s3122_s3 = inlined_call_operand.vmem [shape: bf16[2,32,96], index: 3, kind: input, shape index: {}]   ;;  %s3123_s4 = inlined_call_operand.hbm [shape: f32[2,1,96], index: 4, kind: input, shape index: {}]   ;;  %s3124_s5 = inlined_call_operand.vmem [shape: bf16[2,32,32], index: 5, kind: input, shape index: {}]   ;;  %s3125_s6 = inlined_call_operand.vmem [shape: bf16[2,32,64], index: 6, kind: input, shape index: {}]   ;;  %s3126_s7 = inlined_call_operand.hbm [shape: f32[2,1,64], index: 7, kind: input, shape index: {}]   ;;  %s3127_s8 = inlined_call_operand.vmem [shape: bf16[2,64,32], index: 8, kind: input, shape index: {}]   ;;  %s3128_s9 = inlined_call_operand.vmem [shape: f32[2,6,32], index: 9, kind: input, shape index: {}]   ;;  %s3129_s10 = inlined_call_operand.hbm [shape: f32[2,32], index: 10, kind: input, shape index: {}]   ;;  %s3130_s11 = inlined_call_operand.vmem [shape: bf16[32,32], index: 11, kind: input, shape index: {}]   ;;  %s3131_s12 = inlined_call_operand.vmem [shape: f32[1,32], index: 12, kind: input, shape index: {}]   ;;  %s3132_s13 = inlined_call_operand.hbm [shape: f32[2,8,32], index: 13, kind: output, shape index: {}]  }
   0x1   :  { %3164 = sst [smem:[#allocation28_spill]] %s3119_s0 }
   0x2   :  { %3165 = sst [smem:[#allocation29_spill]] %s3120_s1 }
   0x3   :  { %3166 = sst [smem:[#allocation30_spill]] %s3121_s2 }
   0x4   :  { %3167 = sst [smem:[#allocation31_spill]] %s3122_s3 }
   0x5   :  { %3168 = sst [smem:[#allocation32_spill]] %s3123_s4 }
   0x6   :  { %3169 = sst [smem:[#allocation33_spill]] %s3124_s5 }
   0x7   :  { %3170 = sst [smem:[#allocation34_spill]] %s3125_s6 }
   0x8   :  { %3171 = sst [smem:[#allocation35_spill]] %s3126_s7 }
   0x9   :  { %3172 = sst [smem:[#allocation36_spill]] %s3127_s8 }
   0xa   :  { %3173 = sst [smem:[#allocation37_spill]] %s3128_s9 }
   0xb   :  { %3174 = sst [smem:[#allocation38_spill]] %s3129_s10 }
   0xc   :  { %3175 = sst [smem:[#allocation39_spill]] %s3130_s11 }
   0xd   :  { %3176 = sst [smem:[#allocation40_spill]] %s3131_s12 }
   0xe   :  { %3177 = sst [smem:[#allocation41_spill]] %s3132_s13 }
   0xf   :  { %18 = vsyncpa [#allocation4], 0 }
  0x10   :  { %20 = vsyncpa [#allocation4 + $0x1], 0 }
  0x11   :  { %21 = vsyncpa [#allocation7], 0 }
  0x12   :  { %22 = vsyncpa [#allocation5], 0 }
  0x13   :  { %24 = vsyncpa [#allocation5 + $0x1], 0  ;;  %s2534_s25 = smov 0   ;;  %s2536_s26 = smov 0  }
  0x14   :  { %s2538_s27 = smov 0   ;;  %s2540_s28 = smov 0  }
  0x15   :  { %s2542_s29 = smov 0   ;;  %s2544_s30 = smov 0  }
  0x16   :  { %s2546_s14 = smov 0   ;;  %s2548_s15 = smov 0  }
  0x17   :  { %s2550_s16 = smov 0   ;;  %s2552_s17 = smov 0  }
  0x18   :  { %s2554_s18 = smov 0  }
  0x19 LB: > { %3178 = sst [smem:[#allocation17_spill]] %s2416_s28  ;;  %s1799_s19 = sadd.s32 4294967294, %s2444_s18   ;;  %s2444_s18 = sphi %s2554_s18, %s30_s18   ;;  %s2440_s17 = sphi %s2552_s17, %s3249_s17   ;;  %s2436_s16 = sphi %s2550_s16, %s3248_s16   ;;  %s2432_s15 = sphi %s2548_s15, %s3247_s15   ;;  %s2428_s14 = sphi %s2546_s14, %s3246_s14   ;;  %s2424_s30 = sphi %s2544_s30, %s3245_s30   ;;  %s2420_s29 = sphi %s2542_s29, %s3254_s29   ;;  %s2416_s28 = sphi %s2540_s28, %s3253_s28   ;;  %s2412_s27 = sphi %s2538_s27, %s3252_s27   ;;  %s2408_s26 = sphi %s2536_s26, %s3251_s26   ;;  %s2404_s25 = sphi %s2534_s25, %s3250_s25  }
  0x1a   : > { %3179 = sst [smem:[#allocation18_spill]] %s2424_s30  ;;  %p3138_p0 = scmp.ne.s32.totalorder %s2424_s30, %s2420_s29 }
  0x1b   : > { %3180 = sst [smem:[#allocation19_spill]] %s2436_s16  ;;  %p3137_p1 = scmp.eq.s32.totalorder %s2444_s18, 0 }
  0x1c   : > { %3181 = sst [smem:[#allocation20_spill]] %s2440_s17  ;;  %p3139_p2 = scmp.ne.s32.totalorder %s2420_s29, %s2416_s28 }
  0x1d   : > { %3182 = sst [smem:[#allocation21_spill]] %s2444_s18  ;;  %p384_p3 = scmp.eq.s32.totalorder %s1799_s19, 3 }
  0x1e   : > { %p84_p4 = por %p3137_p1, %p3138_p0  ;;  %p3136_p5 = scmp.lt.s32.totalorder %s2444_s18, 4 }
  0x1f   : > { %p2606_p6 = por %p384_p3, %p3139_p2  ;;  %s439_s23 = sand.u32 1, %s2444_s18  }
  0x20   : > { %s441_s24 = sand.u32 1, %s2424_s30   ;;  %s1804_s13 = sshll.u32 %s2440_s17, 4 }
  0x21   : > { %s3183_s22 = scalar_select %p2606_p6, 1, 0 }
  0x22   : > { %s3185_s1 = sld [smem:[#allocation29_spill]]  ;;  %s442_s19 = scalar_lea.vmem [#allocation3], %s441_s24 }
  0x23   : > { %3184 = sst [smem:[#allocation22_spill]] %s3183_s22  ;;  %s449_s11 = sshll.u32 %s442_s19, 4  ;;  %s2618_s11 = int_to_ptr.vmem [resolvable:$true] %s449_s11 }
  0x24   : > { %p2622_p7 = pnand %p3136_p5, %p84_p4  ;;  %s2626_s22 = scalar_lea.sflag [#allocation4], %s439_s23 }
  0x26   : > { %p2166_p9 = pneg %p2622_p7 }
  0x28   : > { %s2616_s21 = scalar_lea.hbm %s3185_s1, %s1804_s13  ;;  %s2169_s24 = scalar_lea.hbm %s3185_s1, 32 }
  0x29   : > { %s2164_s12 = scalar_lea.hbm %s2616_s21, 16  ;;  %p2170_p12 = scmp.lt.u32.totalorder %s2616_s21, %s3185_s1 }
  0x2a   : > { %p2165_p8 = scmp.ne.s32.totalorder %s2616_s21, %s2164_s12  ;;  %p2171_p13 = scmp.lt.u32.totalorder %s2169_s24, %s2164_s12 }
  0x2b   : > { %p2173_p4 = scmp.lt.u32.totalorder %s2164_s12, %s2616_s21 }
  0x2c   : > { %p2167_p10 = pnand %p2166_p9, %p2165_p8  ;;  %p2172_p3 = por %p2171_p13, %p2170_p12 }
  0x2e   : > { %p2168_p11 = pneg %p2167_p10  ;;  %p2174_p5 = por %p2173_p4, %p2172_p3 }
  0x30   : > { %p2175_p1 = pnand %p2174_p5, %p2168_p11 }
  0x32   : > { %2178 = shalt.err (!%p2175_p1)
}
  0x33   : > { %s2179_s23 = scalar_lea.vmem %s2618_s11, 16  ;;  %s2446_s13 = smov [#allocation3]  }
  0x34   : > { %p2180_p8 = scmp.ne.s32.totalorder %s2618_s11, %s2179_s23  ;;  %s2184_s20 = sshll.u32 %s2446_s13, 4  ;;  %s2185_s20 = int_to_ptr.vmem [resolvable:$false] %s2184_s20 }
  0x35   : > { %s2186_s8 = scalar_lea.vmem %s2185_s20, 32  ;;  %p2187_p2 = scmp.lt.s32.totalorder %s2618_s11, %s2185_s20 }
  0x36   : > { %p2182_p10 = pnand %p2180_p8, %p2166_p9  ;;  %p2188_p12 = scmp.lt.s32.totalorder %s2186_s8, %s2179_s23 }
  0x38   : > { %p2183_p0 = pneg %p2182_p10  ;;  %p2189_p13 = por %p2188_p12, %p2187_p2 }
  0x3a   : > { %p2190_p3 = pnand %p2189_p13, %p2183_p0 }
  0x3c   : > { %2193 = shalt.err (!%p2190_p3)
}
  0x3d   : > { %2011 = dma.hbm_to_vmem [thread:$0]  (!%p2622_p7), %s2616_s21, 16, %s2618_s11, %s2626_s22  }
  0x3e   : > { %s2655_s12 = sadd.s32 4294967295, %s2444_s18   ;;  %p161_p1 = scmp.ne.s32.totalorder %s2408_s26, %s2404_s25 }
  0x3f   : > { %p3143_p0 = scmp.eq.s32.totalorder %s2655_s12, 0  ;;  %p378_p2 = scmp.eq.s32.totalorder %s2655_s12, 3 }
  0x40   : > { %p1800_p5 = scmp.ge.s32.totalorder %s2444_s18, 1  ;;  %p3187_p9 = scmp.ne.s32.totalorder %s2420_s29, %s2416_s28 }
  0x41   : > { %p2673_p7 = por %p161_p1, %p3143_p0  ;;  %p3190_p4 = scmp.ne.s32.totalorder %s2424_s30, %s2420_s29 }
  0x42   : > { %p2667_p11 = por %p3143_p0, %p3187_p9  ;;  %p391_p10 = scmp.lt.s32.totalorder %s2444_s18, 5 }
  0x43   : > { %s3189_s11 = scalar_select %p2673_p7, 1, 0 }
  0x44   : > { %s3188_s9 = scalar_select %p2667_p11, 1, 0 }
  0x45   : > { %p2680_p8 = por %p378_p2, %p3190_p4  ;;  %p2685_p12 = pnand %p1800_p5, %p391_p10 }
  0x46   : > { %s2447_s24 = smov [#allocation6]   ;;  %s39_s13 = sadd.s32 1, %s2436_s16 }
  0x47   : > { %s3191_s21 = scalar_select %p2680_p8, 1, 0 }
  0x48   : > { %s3193_s25 = scalar_select %p2685_p12, 1, 0 }
  0x49   : > { %3192 = sst [smem:[#allocation23_spill]] %s3191_s21  ;;  %s404_s19 = sshll.u32 %s2447_s24, 4  ;;  %s405_s19 = int_to_ptr.vmem [resolvable:$true] %s404_s19 }
  0x4a   : > { %p2001_p13 = pneg %p2685_p12  ;;  %p2698_p1 = scmp.ge.s32.totalorder %s39_s13, 2 }
  0x4b   : > { %s3196_s2 = sld [smem:[#allocation30_spill]] }
  0x4c   : > { %p2693_p3 = pnand %p2001_p13, %p3143_p0 }
  0x4d   : > { %s3195_s20 = scalar_select %p2698_p1, 1, 0 }
  0x4e   : > { %s3194_s23 = scalar_select %p2693_p3, 1, 0 }
  0x4f   : > { %p3154_p9 = pneg %p2693_p3 }
  0x51   : > { %s2194_s24 = scalar_lea.hbm %s3196_s2, 128 }
  0x52   : > { %p2195_p5 = scmp.ne.s32.totalorder %s3196_s2, %s2194_s24  ;;  %p2201_p13 = scmp.lt.u32.totalorder %s2194_s24, %s3196_s2 }
  0x54   : > { %p2197_p4 = pnand %p3154_p9, %p2195_p5 }
  0x56   : > { %p2198_p10 = pneg %p2197_p4 }
  0x58   : > { %p2203_p0 = pnand %p2201_p13, %p2198_p10 }
  0x5a   : > { %2206 = shalt.err (!%p2203_p0)
}
  0x5b   : > { %s2207_s8 = scalar_lea.vmem %s405_s19, 128  ;;  %p2215_p7 = scmp.lt.s32.totalorder %s405_s19, %s405_s19 }
  0x5c   : > { %p2208_p2 = scmp.ne.s32.totalorder %s405_s19, %s2207_s8  ;;  %p2216_p11 = scmp.lt.s32.totalorder %s2207_s8, %s2207_s8 }
  0x5e   : > { %p2210_p6 = pnand %p2208_p2, %p3154_p9  ;;  %p2217_p12 = por %p2216_p11, %p2215_p7 }
  0x60   : > { %p2211_p8 = pneg %p2210_p6 }
  0x62   : > { %p2218_p1 = pnand %p2217_p12, %p2211_p8 }
  0x64   : > { %2221 = shalt.err (!%p2218_p1)
}
  0x65   : > { %2004 = dma.hbm_to_vmem [thread:$0]  (!%p2693_p3), %s3196_s2, 128, %s405_s19, [#allocation7]  }
  0x66   : > { %p3197_p6 = scmp.ne.s32.totalorder %s3195_s20, 0  ;;  %s3199_s3 = sadd.s32 1, %s2440_s17 }
  0x67   : > { %p3200_p0 = scmp.eq.s32.totalorder %s2444_s18, 0  ;;  %p3201_p11 = scmp.ne.s32.totalorder %s2412_s27, %s2408_s26 }
  0x68   : > { %s3256_s13 = smov (%p3197_p6, %s39_s13), 0  ;;  %s3258_s3 = smov (!%p3197_p6, %s3199_s3), %s2440_s17 }
  0x69   : > { %3198 = sst [smem:[#allocation24_spill]] %s3256_s13  ;;  %s145_s5 = ssub.s32 %s2436_s16, %s3256_s13 }
  0x6a   : > { %p157_p7 = por %p3201_p11, %p3200_p0  ;;  %p44_p8 = scmp.ge.s32.totalorder %s3258_s3, 2 }
  0x6b   : > { %p146_p12 = scmp.eq.s32.totalorder %s145_s5, 0  ;;  %s3150_s28 = sand.u32 1, %s2412_s27  }
  0x6c   : > { %s3151_s21 = sshll.u32 %s2436_s16, 4  ;;  %s3260_s3 = smov (%p44_p8, %s3258_s3), 0 }
  0x6d   : > { %3202 = sst [smem:[#allocation25_spill]] %s3260_s3  ;;  %s3203_s19 = sadd.s32 1, %s2412_s27 }
  0x6e   : > { %s2750_s8 = scalar_select %p146_p12, %s2412_s27, %s3203_s19  }
  0x6f   : > { %s72_s24 = ssub.s32 %s2440_s17, %s3260_s3  ;;  %s3205_s4 = sld [smem:[#allocation32_spill]] }
  0x70   : > { %3204 = sst [smem:[#allocation26_spill]] %s2750_s8  ;;  %p73_p1 = scmp.eq.s32.totalorder %s72_s24, 0 }
  0x71   : > { %s467_s5 = scalar_lea.vmem [#allocation8], %s3150_s28  ;;  %p3206_p2 = scmp.lt.s32.totalorder %s2444_s18, 4 }
  0x72   : > { %s474_s2 = sshll.u32 %s467_s5, 4  ;;  %s3208_s19 = sadd.s32 1, %s2424_s30  ;;  %s475_s2 = int_to_ptr.vmem [resolvable:$true] %s474_s2 }
  0x73   : > { %p2765_p5 = pnand %p3206_p2, %p157_p7 }
  0x74   : > { %s2772_s24 = scalar_select %p73_p1, %s2424_s30, %s3208_s19  }
  0x75   : > { %s2759_s6 = scalar_lea.hbm %s3205_s4, %s3151_s21  ;;  %p3160_p10 = pneg %p2765_p5 }
  0x76   : > { %s3207_s13 = scalar_select %p2765_p5, 1, 0 }
  0x77   : > { %3209 = sst [smem:[#allocation27_spill]] %s2772_s24  ;;  %s2222_s20 = scalar_lea.hbm %s2759_s6, 16 }
  0x78   : > { %p2223_p4 = scmp.ne.s32.totalorder %s2759_s6, %s2222_s20  ;;  %s2227_s28 = scalar_lea.hbm %s3205_s4, 32 }
  0x79   : > { %p2228_p0 = scmp.lt.u32.totalorder %s2759_s6, %s3205_s4  ;;  %p2229_p11 = scmp.lt.u32.totalorder %s2227_s28, %s2222_s20 }
  0x7a   : > { %p2225_p13 = pnand %p3160_p10, %p2223_p4  ;;  %p2231_p8 = scmp.lt.u32.totalorder %s2222_s20, %s2759_s6 }
  0x7b   : > { %p2230_p7 = por %p2229_p11, %p2228_p0 }
  0x7c   : > { %p2226_p6 = pneg %p2225_p13 }
  0x7d   : > { %p2232_p12 = por %p2231_p8, %p2230_p7 }
  0x7f   : > { %p2233_p1 = pnand %p2232_p12, %p2226_p6 }
  0x81   : > { %2236 = shalt.err (!%p2233_p1)
}
  0x82   : > { %s2237_s19 = scalar_lea.vmem %s475_s2, 16  ;;  %s2448_s17 = smov [#allocation8]  }
  0x83   : > { %p2238_p2 = scmp.ne.s32.totalorder %s475_s2, %s2237_s19  ;;  %s2242_s1 = sshll.u32 %s2448_s17, 4  ;;  %s2243_s1 = int_to_ptr.vmem [resolvable:$false] %s2242_s1 }
  0x84   : > { %s2244_s5 = scalar_lea.vmem %s2243_s1, 32  ;;  %p2245_p9 = scmp.lt.s32.totalorder %s475_s2, %s2243_s1 }
  0x85   : > { %p2240_p4 = pnand %p2238_p2, %p3160_p10  ;;  %p2246_p3 = scmp.lt.s32.totalorder %s2244_s5, %s2237_s19 }
  0x87   : > { %p2241_p13 = pneg %p2240_p4  ;;  %p2247_p0 = por %p2246_p3, %p2245_p9 }
  0x89   : > { %p2248_p11 = pnand %p2247_p0, %p2241_p13 }
  0x8b   : > { %2251 = shalt.err (!%p2248_p11)
}
  0x8c   : > { %2014 = dma.hbm_to_vmem [thread:$0]  (!%p2765_p5), %s2759_s6, 16, %s475_s2, %s2626_s22  }
  0x8d   : > { %s2449_s3 = smov [#allocation10]   ;;  %s3210_s21 = sshll.u32 %s2436_s16, 4 }
  0x8e   : > { %s415_s28 = sshll.u32 %s2449_s3, 4  ;;  %s3211_s7 = sld [smem:[#allocation35_spill]]  ;;  %s416_s28 = int_to_ptr.vmem [resolvable:$true] %s415_s28 }
  0x8f   : > { %s3212_s19 = sand.u32 1, %s2412_s27   ;;  %s3213_s10 = sld [smem:[#allocation38_spill]] }
  0x90   : > { %s500_s1 = scalar_lea.vmem [#allocation9], %s3212_s19  ;;  %p3214_p9 = scmp.ne.s32.totalorder %s3194_s23, 0 }
  0x91   : > { %s507_s5 = sshll.u32 %s500_s1, 4  ;;  %s508_s5 = int_to_ptr.vmem [resolvable:$true] %s507_s5 }
  0x92   : > { %p3215_p6 = pneg %p3214_p9 }
  0x94   : > { %s2801_s4 = scalar_lea.hbm %s3211_s7, %s3210_s21 }
  0x95   : > { %s2252_s8 = scalar_lea.hbm %s3213_s10, 32 }
  0x96   : > { %p2253_p3 = scmp.ne.s32.totalorder %s3213_s10, %s2252_s8  ;;  %p2259_p12 = scmp.lt.u32.totalorder %s2252_s8, %s3213_s10 }
  0x98   : > { %p2255_p7 = pnand %p2253_p3, %p3215_p6 }
  0x9a   : > { %p2256_p8 = pneg %p2255_p7 }
  0x9c   : > { %p2261_p1 = pnand %p2259_p12, %p2256_p8 }
  0x9e   : > { %2264 = shalt.err (!%p2261_p1)
}
  0x9f   : > { %s2265_s3 = scalar_lea.vmem %s416_s28, 32  ;;  %p3216_p4 = pmov %p3215_p6 }
  0xa0   : > { %p2266_p2 = scmp.ne.s32.totalorder %s416_s28, %s2265_s3  ;;  %p2273_p11 = scmp.lt.s32.totalorder %s416_s28, %s416_s28 }
  0xa1   : > { %p2274_p10 = scmp.lt.s32.totalorder %s2265_s3, %s2265_s3 }
  0xa2   : > { %p2268_p13 = pnand %p2266_p2, %p3216_p4 }
  0xa3   : > { %p2275_p5 = por %p2274_p10, %p2273_p11 }
  0xa4   : > { %p2269_p0 = pneg %p2268_p13 }
  0xa6   : > { %p2276_p3 = pnand %p2275_p5, %p2269_p0 }
  0xa8   : > { %2279 = shalt.err (!%p2276_p3)
}
  0xa9   : > { %2007 = dma.hbm_to_vmem [thread:$0]  (!%p3214_p9), %s3213_s10, 32, %s416_s28, [#allocation7]  }
  0xaa   : > { %s2280_s18 = scalar_lea.hbm %s2801_s4, 16  ;;  %p3217_p7 = scmp.ne.s32.totalorder %s3207_s13, 0 }
  0xab   : > { %p2281_p6 = scmp.ne.s32.totalorder %s2801_s4, %s2280_s18  ;;  %s2285_s23 = scalar_lea.hbm %s3211_s7, 32 }
  0xac   : > { %p3218_p8 = pneg %p3217_p7  ;;  %p2286_p5 = scmp.lt.u32.totalorder %s2801_s4, %s3211_s7 }
  0xad   : > { %p2287_p1 = scmp.lt.u32.totalorder %s2285_s23, %s2280_s18  ;;  %p2289_p4 = scmp.lt.u32.totalorder %s2280_s18, %s2801_s4 }
  0xae   : > { %p2283_p12 = pnand %p2281_p6, %p3218_p8 }
  0xaf   : > { %p2288_p2 = por %p2287_p1, %p2286_p5 }
  0xb0   : > { %p2284_p10 = pneg %p2283_p12 }
  0xb1   : > { %p2290_p13 = por %p2289_p4, %p2288_p2 }
  0xb3   : > { %p2291_p9 = pnand %p2290_p13, %p2284_p10 }
  0xb5   : > { %2294 = shalt.err (!%p2291_p9)
}
  0xb6   : > { %s2295_s28 = scalar_lea.vmem %s508_s5, 16  ;;  %p3219_p11 = pmov %p3218_p8 }
  0xb7   : > { %p2296_p0 = scmp.ne.s32.totalorder %s508_s5, %s2295_s28  ;;  %s2450_s17 = smov [#allocation9]  }
  0xb8   : > { %s2300_s19 = sshll.u32 %s2450_s17, 4  ;;  %s2301_s19 = int_to_ptr.vmem [resolvable:$false] %s2300_s19 }
  0xb9   : > { %p2298_p3 = pnand %p2296_p0, %p3219_p11  ;;  %s2302_s1 = scalar_lea.vmem %s2301_s19, 32 }
  0xba   : > { %p2303_p8 = scmp.lt.s32.totalorder %s508_s5, %s2301_s19  ;;  %p2304_p12 = scmp.lt.s32.totalorder %s2302_s1, %s2295_s28 }
  0xbb   : > { %p2299_p6 = pneg %p2298_p3 }
  0xbc   : > { %p2305_p1 = por %p2304_p12, %p2303_p8 }
  0xbe   : > { %p2306_p5 = pnand %p2305_p1, %p2299_p6 }
  0xc0   : > { %2309 = shalt.err (!%p2306_p5)
}
  0xc1   : > { %2017 = dma.hbm_to_vmem [thread:$0]  (!%p3217_p7), %s2801_s4, 16, %s508_s5, %s2626_s22  }
  0xc2   : > { %p3220_p10 = scmp.ne.s32.totalorder %s3193_s25, 0 }
  0xc3   : > { %s533_s2 = sand.u32 (!%p3220_p10), 1, %s2655_s12   ;;  %s2849_s6 = sand.u32 (!%p3220_p10), 1, %s2420_s29  }
  0xc4   : > { %531 = sbr.rel (%p3220_p10) target bundleno = 3239 (0xca7), region = 72  ;;  %s534_s3 = scalar_lea.sflag (!%p3220_p10), [#allocation4], %s533_s2 }
  0xc5   : > { %p3221_p2 = scmp.ne.s32.totalorder (!%p3220_p10), %s3188_s9, 0 }
  0xcb   : > { %2383 = dma.done.wait (%p3221_p2), %s534_s3, 16  }
  0xcc   : > { %2385 = vsyncadd (%p3221_p2), %s534_s3, 4294967280  ;;  %p3222_p4 = scmp.eq.s32.totalorder %s2655_s12, 0 }
  0xce   : > { %2387 = dma.done.wait (%p3222_p4), [#allocation7], 128   ;;  %p3223_p7 = pmov %p3222_p4 }
  0xcf   : > { %s547_s4 = sand.u32 1, %s2408_s26   ;;  %p3224_p13 = scmp.ne.s32.totalorder %s3189_s11, 0 }
  0xd0   : > { %2389 = vsyncadd (%p3223_p7), [#allocation7], 4294967168  ;;  %s2861_s22 = scalar_lea.vmem [#allocation8], %s547_s4 }
  0xd1   : > { %2391 = dma.done.wait (%p3224_p13), %s534_s3, 32  }
  0xd2   : > { %2393 = vsyncadd (%p3224_p13), %s534_s3, 4294967264  ;;  %s2867_s25 = scalar_lea.vmem [#allocation9], %s547_s4  ;;  %p3225_p9 = pmov %p3222_p4 }
  0xd3   : > { %p3226_p0 = pmov %p3222_p4 }
  0xd4   : > { %2395 = dma.done.wait (%p3225_p9), [#allocation7], 32  }
  0xd5   : > { %2397 = vsyncadd (%p3226_p0), [#allocation7], 4294967264  ;;  %s1810_s9 = sshll.u32 %s2849_s6, 3  ;;  %p638_p11 = scmp.lt.s32.totalorder %s2432_s15, 1 }
  0xd6   : > { %p642_p3 = scmp.lt.s32.totalorder %s2428_s14, 1  ;;  %s3227_s8 = sld [smem:[#allocation28_spill]] }
  0xd7   : > { %s639_s13 = scalar_select %p638_p11, %s2432_s15, 1 }
  0xd8   : > { %s643_s5 = scalar_select %p642_p3, %s2428_s14, 1 }
  0xd9   : > { %s1811_s11 = sshll.u32 %s639_s13, 3  ;;  %s3228_s12 = sld [smem:[#allocation31_spill]] }
  0xda   : > { %s1856_s23 = sshll.u32 %s643_s5, 4  ;;  %s3229_s1 = sld [smem:[#allocation33_spill]] }
  0xdb   : > { %s3230_s0 = sld [smem:[#allocation34_spill]]  ;;  %s1859_s13 = sshll.u32 %s643_s5, 5 }
  0xdc   : > { %s641_s24 = scalar_lea.vmem %s3227_s8, %s1811_s11  ;;  %s3231_s11 = sld [smem:[#allocation36_spill]] }
  0xdd   : > { %s1820_s8 = sshll.u32 %s643_s5, 3  ;;  %s2906_s17 = scalar_lea.vmem [#allocation11], %s1810_s9 }
  0xde   : > { %p1821_p6 = scmp.ne.s32.totalorder %s2428_s14, 0 }
  0xdf   : > { %s2884_s28 = scalar_lea.vmem %s3228_s12, %s1856_s23  ;;  %s3232_s12 = sld [smem:[#allocation37_spill]]  ;;  %v671_v0 = vld [vmem:[%s641_s24] sm:$0xff] (!%p1821_p6)  ;;  %v672_v1 = vld [vmem:[#allocation6] sm:$0xff] (!%p1821_p6)  ;;  %vm674_vm0 = vcmask (!%p1821_p6), 261120  }
  0xe0   : > { %s2889_s2 = scalar_lea.vmem %s3229_s1, %s1856_s23  ;;  %670 = sbr.rel (%p1821_p6) target bundleno = 231 (0xe7), region = 96  ;;  %v673_v2 = vadd.f32 (!%p1821_p6), %v672_v1, %v671_v0 }
  0xe1   : > { %s2894_s7 = scalar_lea.vmem %s3230_s0, %s1856_s23 }
  0xe2   : > { %s2899_s18 = scalar_lea.vmem %s3231_s11, %s1859_s13  ;;  %675 = vst.msk [vmem:[#allocation2] sm:$0xff] (!%p1821_p6), %vm674_vm0, %v673_v2 }
  0xe5   : > { %s2904_s16 = scalar_lea.vmem %s3232_s12, %s1820_s8 }
  0xe7 PF: > { %vm679_vm1 = vcmask 261120   ;;  %v2130_v10 = vld [vmem:[%s2884_s28] sm:$0xff]   ;;  %v2451_v11 = vmov 0.0   ;;  %vm2452_vm2 = vmmov 0   ;;  %v2131_v12 = vld [vmem:[%s2884_s28 + $0x8] sm:$0xff]   ;;  %v694_v15 = vlaneseq  ;;  %s2453_s10 = smov 104  }
  0xe8   : > { %1893 = vmatprep.subr.bf16.mxu0 %v2451_v11  ;;  %1897 = vmatprep.mubr.msk.bf16.mxu0 %vm2452_vm2, %v2451_v11  ;;  %v2929_v19 = vld [vmem:[%s2904_s16] sm:$0x3f]  ;;  %s2454_s16 = smov 120   ;;  %s2455_s0 = smov 112   ;;  %vm794_vm3 = vcmask 64512   ;;  %vm1033_vm4 = vcmask 1043456  }
  0xe9   : > { %v2909_v3 = vld [vmem:[#allocation2] sm:$0xff]  ;;  %1894 = vmatpush3.bf16.msra.mxu0 %v2130_v10  ;;  %1901 = vmatprep.subr.bf16.mxu1 %v2451_v11  ;;  %v2925_v17 = vshrl.u32 %v694_v15, 7  ;;  %s2456_s9 = smov 96   ;;  %s3233_s5 = scalar_lea.vmem [#allocation3], %s2849_s6  ;;  %vm1242_vm5 = vcmask 130048   ;;  %vm1244_vm6 = vcmask 195584  }
  0xea   : > { %v680_v4 = vsel %vm679_vm1, %v2909_v3, 0.0  ;;  %1895 = vmatprep.subr.bf16.mxu0 %v2451_v11  ;;  %1903 = vmatprep.mubr.msk.bf16.mxu1 %vm2452_vm2, %v2451_v11  ;;  %v1822_v28 = vld [vmem:[%s2861_s22] ss:$0 sm:$0xff]  ;;  %s2457_s22 = smov 64   ;;  %s2458_s24 = smov 8   ;;  %vm1439_vm7 = vcmask 523264  }
  0xeb   : > { %681 = vadd.xlane.f32.xlu0 %v680_v4  ;;  %v696_v18 = vsub.s32 0, %v2925_v17  ;;  %v701_v20 = vsub.s32 1, %v2925_v17  ;;  %v1826_v51 = vld [vmem:[%s3233_s5] ss:$0 sm:$0xff]  ;;  %s2459_s23 = smov 16   ;;  %s2460_s28 = smov 24  }
  0xec   : > { %p1847_p8 = scmp.ne.s32.totalorder %s2428_s14, 1 }
  0xed   : > { %1896 = vmatpush3.bf16.msra.mxu0 %v2131_v12  ;;  %v697_v21 = vrot.slane %v2929_v19, %v696_v18  ;;  %v702_v24 = vrot.slane %v2929_v19, %v701_v20  ;;  %s3234_s19 = sld [smem:[#allocation39_spill]] (!%p1847_p8)  ;;  %vm2462_vm8 = vmmov (!%p1847_p8), 0   ;;  %s3235_s4 = sld [smem:[#allocation40_spill]] (!%p1847_p8) }
  0xee   : > { %1907 = vmatprep.subr.bf16.mxu0 %v2451_v11 }
 0x178   : > { %v682_v5 = vpop.xlane.xlu0 %681 }
 0x179   : > { %v684_v6 = vmul.f32 0.03125, %v682_v5 }
 0x17b   : > { %v685_v7 = vsub.f32 %v2909_v3, %v684_v6 }
 0x17d   : > { %v686_v8 = vmul.f32 %v685_v7, %v685_v7 }
 0x17f   : > { %v687_v9 = vsel %vm679_vm1, %v686_v8, 0.0 }
 0x180   : > { %688 = vadd.xlane.f32.xlu0 %v687_v9 }
 0x20d   : > { %v689_v13 = vpop.xlane.xlu0 %688 }
 0x20e   : > { %v690_v14 = vmul.f32 0.03125, %v689_v13 }
 0x210   : > { %v691_v16 = vadd.f32 1e-06, %v690_v14 }
 0x212   : > { %2140 = vrsqrt.f32 %v691_v16 }
 0x21c   : > { %v2141_v22 = vpop.eup %2140 }
 0x21d   : > { %v693_v23 = vmul.f32 %v2141_v22, %v685_v7 }
 0x21f   : > { %v698_v25 = vmul.f32 %v697_v21, %v693_v23 }
 0x221   : > { %v703_v26 = vadd.f32 %v702_v24, %v698_v25 }
 0x223   : > { %v704_v27 = vpack.c.bf16 %v703_v26, %v703_v26 }
 0x225   : > { %1898 = vmatmul.mubr.msk.bf16.vlgmr.msra.gmra.mrb[0].mxu0 %vm679_vm1, %v704_v27 }
 0x226   : > { %1909 = vmatprep.mubr.msk.bf16.mxu0 %vm2452_vm2, %v2451_v11 }
 0x2f8   : > { %v765_v29 = vpop.f32.mrb[0].mxu0 }
 0x2f9   : > { %v766_v30 = vadd.f32 %v1822_v28, %v765_v29  ;;  %v1899_v31 = vpop.f32.mrb[1].mxu0 }
 0x2fa   : > { %v768_v32 = vpop.f32.mrb[2].mxu0 }
 0x2fb   : > { %778 = vrot.lane.b32.xlu0 %v766_v30, %s2453_s10  ;;  %772 = vrot.lane.b32.xlu1 %v766_v30, %s2454_s16  ;;  %v1900_v33 = vpop.f32.mrb[3].mxu0  ;;  %v781_v34 = vpack.c.bf16 %v766_v30, %v766_v30 }
 0x2ff   : > { %775 = vrot.lane.b32.xlu1 %v766_v30, %s2455_s0 }
 0x303   : > { %792 = vrot.lane.b32.xlu1 %v781_v34, %s2456_s9 }
 0x36d   : > { %v773_v35 = vpop.permute.xlu1 %772  ;;  %v779_v39 = vpop.permute.xlu0 %778 }
 0x36e   : > { %v2942_v36 = vpack.c.bf16 %v773_v35, %v773_v35  ;;  %v784_v41 = vpack.c.bf16 %v779_v39, %v779_v39 }
 0x370   : > { %842 = vrot.lane.b32.xlu1 %v2942_v36, %s2456_s9 }
 0x371   : > { %v776_v37 = vpop.permute.xlu1 %775 }
 0x372   : > { %v2945_v38 = vpack.c.bf16 %v776_v37, %v776_v37 }
 0x374   : > { %891 = vrot.lane.b32.xlu1 %v2945_v38, %s2456_s9 }
 0x375   : > { %v793_v40 = vpop.permute.xlu1 %792 }
 0x376   : > { %v799_v42 = vsel %vm794_vm3, %v793_v40, 0 }
 0x377   : > { %1902 = vmatpush3.bf16.xpose.msra.mxu1 %v799_v42 }
 0x378   : > { %940 = vrot.lane.b32.xlu1 %v784_v41, %s2456_s9  ;;  %1913 = vmatprep.subr.bf16.mxu1 %v2451_v11 }
 0x37c   : > { %1028 = vrot.lane.b32.xlu1 %v781_v34, %s2457_s22 }
 0x37e   : > { %1904 = vmatmul.mubr.msk.bf16.vlgmr.msra.gmra.mrb[0].mxu1 %vm794_vm3, %v781_v34 }
 0x37f   : > { %1915 = vmatprep.mubr.msk.bf16.mxu1 %vm2452_vm2, %v2451_v11 }
 0x3e2   : > { %v843_v43 = vpop.permute.xlu1 %842 }
 0x3e3   : > { %v848_v44 = vsel %vm794_vm3, %v843_v43, 0 }
 0x3e4   : > { %1908 = vmatpush3.bf16.xpose.msra.mxu0 %v848_v44 }
 0x3e5   : > { %1919 = vmatprep.subr.bf16.mxu0 %v2451_v11 }
 0x3e6   : > { %v892_v45 = vpop.permute.xlu1 %891 }
 0x3e7   : > { %v897_v46 = vsel %vm794_vm3, %v892_v45, 0 }
 0x3e8   : > { %1914 = vmatpush3.bf16.xpose.msra.mxu1 %v897_v46 }
 0x3e9   : > { %1925 = vmatprep.subr.bf16.mxu1 %v2451_v11 }
 0x3ea   : > { %v941_v47 = vpop.permute.xlu1 %940 }
 0x3eb   : > { %v946_v48 = vsel %vm794_vm3, %v941_v47, 0  ;;  %1910 = vmatmul.mubr.msk.bf16.vlgmr.msra.gmra.mrb[4].mxu0 %vm794_vm3, %v2942_v36 }
 0x3ec   : > { %1920 = vmatpush3.bf16.xpose.msra.mxu0 %v946_v48  ;;  %1921 = vmatprep.mubr.msk.bf16.mxu0 %vm2452_vm2, %v2451_v11 }
 0x3ed   : > { %1931 = vmatprep.subr.bf16.mxu0 %v2451_v11 }
 0x3ee   : > { %v1029_v49 = vpop.permute.xlu1 %1028 }
 0x3ef   : > { %v1035_v50 = vsel %vm1033_vm4, %v1029_v49, 0  ;;  %1916 = vmatmul.mubr.msk.bf16.vlgmr.msra.gmra.mrb[4].mxu1 %vm794_vm3, %v2945_v38 }
 0x3f0   : > { %1926 = vmatpush3.bf16.msra.mxu1 %v1035_v50  ;;  %1927 = vmatprep.mubr.msk.bf16.mxu1 %vm2452_vm2, %v2451_v11 }
 0x3f1   : > { %1937 = vmatprep.subr.bf16.mxu1 %v2451_v11 }
 0x3f3   : > { %1922 = vmatmul.mubr.msk.bf16.vlgmr.msra.gmra.mrb[8].mxu0 %vm794_vm3, %v784_v41 }
 0x3f4   : > { %1933 = vmatprep.mubr.msk.bf16.mxu0 %vm2452_vm2, %v2451_v11 }
 0x451   : > { %v835_v52 = vpop.f32.mrb[0].mxu1 }
 0x452   : > { %v836_v53 = vadd.f32 %v1826_v51, %v835_v52  ;;  %v1905_v54 = vpop.f32.mrb[1].mxu1 }
 0x453   : > { %v838_v55 = vpop.f32.mrb[2].mxu1  ;;  %v2132_v54 = vld [vmem:[%s2889_s2] sm:$0xff]  }
 0x454   : > { %v1906_v56 = vpop.f32.mrb[3].mxu1  ;;  %v988_v57 = vsel %vm794_vm3, %v836_v53, -inf }
 0x455   : > { %989 = vmax.xlane.f32.xlu1 %v988_v57  ;;  %v2133_v56 = vld [vmem:[%s2889_s2 + $0x8] sm:$0xff]  }
 0x4be   : > { %v884_v58 = vpop.f32.mrb[4].mxu0 }
 0x4bf   : > { %v885_v59 = vadd.f32 %v1826_v51, %v884_v58  ;;  %v1911_v60 = vpop.f32.mrb[5].mxu0 }
 0x4c0   : > { %v887_v61 = vpop.f32.mrb[6].mxu0 }
 0x4c1   : > { %v1912_v62 = vpop.f32.mrb[7].mxu0  ;;  %v991_v63 = vsel %vm794_vm3, %v885_v59, -inf }
 0x4c2   : > { %v933_v0 = vpop.f32.mrb[4].mxu1  ;;  %992 = vmax.xlane.f32.xlu0 %v991_v63 }
 0x4c3   : > { %v934_v1 = vadd.f32 %v1826_v51, %v933_v0  ;;  %v1917_v2 = vpop.f32.mrb[5].mxu1 }
 0x4c4   : > { %v936_v4 = vpop.f32.mrb[6].mxu1 }
 0x4c5   : > { %v1918_v5 = vpop.f32.mrb[7].mxu1  ;;  %v994_v6 = vsel %vm794_vm3, %v934_v1, -inf }
 0x4c6   : > { %995 = vmax.xlane.f32.xlu1 %v994_v6  ;;  %v982_v7 = vpop.f32.mrb[8].mxu0 }
 0x4c7   : > { %v983_v8 = vadd.f32 %v1826_v51, %v982_v7  ;;  %v1923_v9 = vpop.f32.mrb[9].mxu0 }
 0x4c8   : > { %v985_v10 = vpop.f32.mrb[10].mxu0 }
 0x4c9   : > { %v1924_v12 = vpop.f32.mrb[11].mxu0  ;;  %v997_v13 = vsel %vm794_vm3, %v983_v8, -inf }
 0x4ca   : > { %998 = vmax.xlane.f32.xlu0 %v997_v13 }
 0x4d7   : > { %1125 = vrot.lane.b32.xlu1 %v2945_v38, %s2457_s22 }
 0x4db   : > { %1173 = vrot.lane.b32.xlu1 %v784_v41, %s2457_s22 }
 0x4e0   : > { %1077 = vrot.lane.b32.xlu0 %v2942_v36, %s2457_s22 }
 0x4e2   : > { %v990_v14 = vpop.xlane.xlu1 %989 }
 0x4e3   : > { %v1000_v15 = vsub.f32 %v836_v53, %v990_v14 }
 0x4e5   : > { %v1004_v16 = vmul.f32 1.442695, %v1000_v15 }
 0x4e7   : > { %2142 = vpow2.f32 %v1004_v16 }
 0x4f1   : > { %v2143_v21 = vpop.eup %2142 }
 0x4f2   : > { %v1024_v22 = vpack.c.bf16 %v2143_v21, %v2143_v21  ;;  %v1012_v47 = vsel %vm794_vm3, %v2143_v21, 0.0 }
 0x4f4   : > { %1928 = vmatmul.mubr.msk.bf16.vlgmr.msra.gmra.mrb[8].mxu1 %vm794_vm3, %v1024_v22 }
 0x4f5   : > { %1939 = vmatprep.mubr.msk.bf16.mxu1 %vm2452_vm2, %v2451_v11 }
 0x54f   : > { %v993_v23 = vpop.xlane.xlu0 %992 }
 0x550   : > { %v1001_v24 = vsub.f32 %v885_v59, %v993_v23 }
 0x552   : > { %v1006_v25 = vmul.f32 1.442695, %v1001_v24 }
 0x553   : > { %v996_v26 = vpop.xlane.xlu1 %995 }
 0x554   : > { %2144 = vpow2.f32 %v1006_v25  ;;  %v1002_v27 = vsub.f32 %v934_v1, %v996_v26 }
 0x556   : > { %v1008_v28 = vmul.f32 1.442695, %v1002_v27  ;;  %v1253_v27 = vsub.s32 4, %v2925_v17 }
 0x557   : > { %v1126_v29 = vpop.permute.xlu1 %1125  ;;  %v999_v30 = vpop.xlane.xlu0 %998 }
 0x558   : > { %2146 = vpow2.f32 %v1008_v28  ;;  %v1131_v31 = vsel %vm1033_vm4, %v1126_v29, 0  ;;  %v1003_v32 = vsub.f32 %v983_v8, %v999_v30  ;;  %v1254_v28 = vrot.slane %v2929_v19, %v1253_v27 }
 0x559   : > { %1938 = vmatpush3.bf16.msra.mxu1 %v1131_v31 }
 0x55a   : > { %v1010_v33 = vmul.f32 1.442695, %v1003_v32  ;;  %1949 = vmatprep.subr.bf16.mxu1 %v2451_v11 }
 0x55b   : > { %v1078_v34 = vpop.permute.xlu0 %1077  ;;  %v1174_v37 = vpop.permute.xlu1 %1173 }
 0x55c   : > { %2148 = vpow2.f32 %v1010_v33  ;;  %v1083_v35 = vsel %vm1033_vm4, %v1078_v34, 0  ;;  %v1179_v40 = vsel %vm1033_vm4, %v1174_v37, 0 }
 0x55d   : > { %1932 = vmatpush3.bf16.msra.mxu0 %v1083_v35 }
 0x55e   : > { %v2145_v36 = vpop.eup %2144  ;;  %1943 = vmatprep.subr.bf16.mxu0 %v2451_v11 }
 0x55f   : > { %v1015_v38 = vsel %vm794_vm3, %v2145_v36, 0.0  ;;  %v1025_v39 = vpack.c.bf16 %v2145_v36, %v2145_v36 }
 0x560   : > { %1016 = vadd.xlane.f32.xlu0 %v1015_v38 }
 0x561   : > { %1934 = vmatmul.mubr.msk.bf16.vlgmr.msra.gmra.mrb[12].mxu0 %vm794_vm3, %v1025_v39 }
 0x562   : > { %v2147_v41 = vpop.eup %2146  ;;  %1944 = vmatpush3.bf16.msra.mxu0 %v1179_v40  ;;  %1945 = vmatprep.mubr.msk.bf16.mxu0 %vm2452_vm2, %v2451_v11 }
 0x563   : > { %v1018_v42 = vsel %vm794_vm3, %v2147_v41, 0.0  ;;  %v1026_v43 = vpack.c.bf16 %v2147_v41, %v2147_v41  ;;  %1957 = vmatprep.subr.bf16.mxu0 %v2451_v11  ;;  %v2134_v41 = vld [vmem:[%s2894_s7] sm:$0xff]  }
 0x564   : > { %1019 = vadd.xlane.f32.xlu1 %v1018_v42  ;;  %v2135_v42 = vld [vmem:[%s2894_s7 + $0x8] sm:$0xff]  }
 0x565   : > { %1940 = vmatmul.mubr.msk.bf16.vlgmr.msra.gmra.mrb[12].mxu1 %vm794_vm3, %v1026_v43  ;;  %v2136_v43 = vld [vmem:[%s2899_s18] sm:$0xff]  }
 0x566   : > { %v2149_v44 = vpop.eup %2148  ;;  %1953 = vmatprep.mubr.msk.bf16.mxu1 %vm2452_vm2, %v2451_v11  ;;  %1950 = vmatpush3.bf16.msra.mxu1 %v2132_v54 }
 0x567   : > { %v1021_v45 = vsel %vm794_vm3, %v2149_v44, 0.0  ;;  %v1027_v46 = vpack.c.bf16 %v2149_v44, %v2149_v44  ;;  %1951 = vmatprep.subr.bf16.mxu1 %v2451_v11 }
 0x568   : > { %1022 = vadd.xlane.f32.xlu0 %v1021_v45 }
 0x569   : > { %1946 = vmatmul.mubr.msk.bf16.vlgmr.msra.gmra.mrb[16].mxu0 %vm794_vm3, %v1027_v46 }
 0x56a   : > { %1961 = vmatprep.mubr.msk.bf16.mxu0 %vm2452_vm2, %v2451_v11  ;;  %1952 = vmatpush3.bf16.msra.mxu1 %v2133_v56  ;;  %v2138_v56 = vld [vmem:[%s2899_s18 + $0x10] sm:$0xff]  }
 0x56b   : > { %1965 = vmatprep.subr.bf16.mxu1 %v2451_v11  ;;  %1958 = vmatpush3.bf16.msra.mxu0 %v2134_v41 }
 0x56c   : > { %1013 = vadd.xlane.f32.xlu0 %v1012_v47  ;;  %1959 = vmatprep.subr.bf16.mxu0 %v2451_v11  ;;  %v1326_v47 = vsub.s32 2, %v2925_v17 }
 0x56f   : > { %1960 = vmatpush3.bf16.msra.mxu0 %v2135_v42 }
 0x5c7   : > { %v1071_v48 = vpop.f32.mrb[8].mxu1 }
 0x5c8   : > { %v1929_v49 = vpop.f32.mrb[9].mxu1 }
 0x5c9   : > { %v1074_v50 = vpop.f32.mrb[10].mxu1  ;;  %v1327_v49 = vrot.slane %v2929_v19, %v1326_v47 }
 0x5ca   : > { %v1930_v51 = vpop.f32.mrb[11].mxu1 }
 0x5ed   : > { %v1017_v52 = vpop.xlane.xlu0 %1016 }
 0x5ee   : > { %2150 = vrcp.f32 %v1017_v52 }
 0x5f1   : > { %v1020_v53 = vpop.xlane.xlu1 %1019 }
 0x5f2   : > { %2152 = vrcp.f32 %v1020_v53 }
 0x5f5   : > { %v1023_v55 = vpop.xlane.xlu0 %1022 }
 0x5f6   : > { %2154 = vrcp.f32 %v1023_v55 }
 0x5f8   : > { %v2151_v57 = vpop.eup %2150 }
 0x5f9   : > { %v1014_v13 = vpop.xlane.xlu0 %1013 }
 0x5fa   : > { %2156 = vrcp.f32 %v1014_v13 }
 0x5fc   : > { %v2153_v63 = vpop.eup %2152 }
 0x600   : > { %v2155_v6 = vpop.eup %2154 }
 0x604   : > { %v2157_v14 = vpop.eup %2156 }
 0x605   : > { %v1225_v16 = vmul.f32 %v2157_v14, %v1071_v48  ;;  %v1331_v48 = vsub.s32 3, %v2925_v17 }
 0x607   : > { %v1332_v52 = vrot.slane %v2929_v19, %v1331_v48 }
 0x634   : > { %v1119_v58 = vpop.f32.mrb[12].mxu0 }
 0x635   : > { %v1226_v59 = vmul.f32 %v2151_v57, %v1119_v58  ;;  %v1935_v60 = vpop.f32.mrb[13].mxu0  ;;  %v2139_v57 = vld [vmem:[%s2899_s18 + $0x18] sm:$0xff]   ;;  %v1838_v58 = vld [vmem:[%s2867_s25] ss:$0 sm:$0xff] }
 0x636   : > { %v1122_v61 = vpop.f32.mrb[14].mxu0 }
 0x637   : > { %1230 = vrot.lane.b32.xlu1 %v1226_v59, %s2458_s24  ;;  %v1936_v62 = vpop.f32.mrb[15].mxu0 }
 0x638   : > { %v1167_v0 = vpop.f32.mrb[12].mxu1 }
 0x639   : > { %v1227_v1 = vmul.f32 %v2153_v63, %v1167_v0  ;;  %v1941_v2 = vpop.f32.mrb[13].mxu1 }
 0x63a   : > { %v1170_v4 = vpop.f32.mrb[14].mxu1  ;;  %v1413_v2 = vsub.s32 5, %v2925_v17 }
 0x63b   : > { %v1942_v5 = vpop.f32.mrb[15].mxu1  ;;  %1234 = vrot.lane.b32.xlu0 %v1227_v1, %s2459_s23 }
 0x63c   : > { %v1215_v7 = vpop.f32.mrb[16].mxu0  ;;  %v1414_v4 = vrot.slane %v2929_v19, %v1413_v2 }
 0x63d   : > { %v1228_v8 = vmul.f32 %v2155_v6, %v1215_v7  ;;  %v1947_v9 = vpop.f32.mrb[17].mxu0 }
 0x63e   : > { %v1218_v10 = vpop.f32.mrb[18].mxu0 }
 0x63f   : > { %1238 = vrot.lane.b32.xlu1 %v1228_v8, %s2460_s28  ;;  %v1948_v12 = vpop.f32.mrb[19].mxu0 }
 0x6a9   : > { %v1231_v15 = vpop.permute.xlu1 %1230 }
 0x6aa   : > { %v1241_v22 = vsel %vm794_vm3, %v1225_v16, %v1231_v15  ;;  %v2160_v16 = vld [vmem:[%s3234_s19] sm:$0xff] (!%p1847_p8)  }
 0x6ad   : > { %v1235_v21 = vpop.permute.xlu0 %1234 }
 0x6ae   : > { %v1243_v23 = vsel %vm1242_vm5, %v1241_v22, %v1235_v21  ;;  %v2461_v21 = vmov (!%p1847_p8), 0.0   ;;  %v2161_v22 = vld [vmem:[%s3234_s19 + $0x8] sm:$0xff] (!%p1847_p8)  }
 0x6af   : > { %1977 = vmatprep.subr.bf16.mxu0 (!%p1847_p8), %v2461_v21 }
 0x6b1   : > { %v1239_v24 = vpop.permute.xlu1 %1238 }
 0x6b2   : > { %v1245_v25 = vsel %vm1244_vm6, %v1243_v23, %v1239_v24 }
 0x6b3   : > { %v1246_v26 = vpack.c.bf16 %v1245_v25, %v1245_v25 }
 0x6b5   : > { %1954 = vmatmul.mubr.msk.bf16.vlgmr.msra.gmra.mrb[16].mxu1 %vm679_vm1, %v1246_v26  ;;  %v1489_v26 = vld [vmem:[#allocation10] sm:$0x3] (!%p1847_p8) }
 0x6b6   : > { %1973 = vmatprep.mubr.msk.bf16.mxu1 %vm2452_vm2, %v2451_v11  ;;  %1966 = vmatpush3.bf16.msra.mxu1 %v2136_v43  ;;  %v1506_v27 = vrot.slane (!%p1847_p8), %v1489_v26, %v696_v18 }
 0x6b7   : > { %1967 = vmatprep.subr.bf16.mxu1 %v2451_v11 }
 0x788   : > { %v1304_v29 = vpop.f32.mrb[16].mxu1 }
 0x789   : > { %v1305_v30 = vadd.f32 %v1304_v29, %v1254_v28  ;;  %v1955_v31 = vpop.f32.mrb[17].mxu1 }
 0x78a   : > { %v1307_v32 = vpop.f32.mrb[18].mxu1 }
 0x78b   : > { %v1310_v33 = vadd.f32 %v1305_v30, %v2909_v3  ;;  %v1956_v34 = vpop.f32.mrb[19].mxu1  ;;  %v2137_v3 = vld [vmem:[%s2899_s18 + $0x8] sm:$0xff]   ;;  %v1511_v30 = vrot.slane (!%p1847_p8), %v1489_v26, %v701_v20 }
 0x78c   : > { %1968 = vmatpush3.bf16.msra.mxu1 %v2137_v3  ;;  %v1848_v34 = vld [vmem:[%s3235_s4] ss:$0 sm:$0xff] (!%p1847_p8) }
 0x78d   : > { %v1311_v35 = vsel %vm679_vm1, %v1310_v33, 0.0  ;;  %1969 = vmatprep.subr.bf16.mxu1 %v2451_v11 }
 0x78e   : > { %1312 = vadd.xlane.f32.xlu1 %v1311_v35 }
 0x790   : > { %1970 = vmatpush3.bf16.msra.mxu1 %v2138_v56 }
 0x791   : > { %1971 = vmatprep.subr.bf16.mxu1 %v2451_v11 }
 0x794   : > { %1972 = vmatpush3.bf16.msra.mxu1 %v2139_v57 }
 0x81b   : > { %v1313_v36 = vpop.xlane.xlu1 %1312 }
 0x81c   : > { %v1314_v37 = vmul.f32 0.03125, %v1313_v36 }
 0x81e   : > { %v1315_v38 = vsub.f32 %v1310_v33, %v1314_v37 }
 0x820   : > { %v1316_v39 = vmul.f32 %v1315_v38, %v1315_v38 }
 0x822   : > { %v1317_v40 = vsel %vm679_vm1, %v1316_v39, 0.0 }
 0x823   : > { %1318 = vadd.xlane.f32.xlu0 %v1317_v40 }
 0x8b0   : > { %v1319_v44 = vpop.xlane.xlu0 %1318 }
 0x8b1   : > { %v1320_v45 = vmul.f32 0.03125, %v1319_v44 }
 0x8b3   : > { %v1321_v46 = vadd.f32 1e-06, %v1320_v45 }
 0x8b5   : > { %2158 = vrsqrt.f32 %v1321_v46 }
 0x8bf   : > { %v2159_v50 = vpop.eup %2158 }
 0x8c0   : > { %v1323_v51 = vmul.f32 %v2159_v50, %v1315_v38 }
 0x8c2   : > { %v1328_v53 = vmul.f32 %v1327_v49, %v1323_v51 }
 0x8c4   : > { %v1333_v54 = vadd.f32 %v1332_v52, %v1328_v53 }
 0x8c6   : > { %v1334_v55 = vpack.c.bf16 %v1333_v54, %v1333_v54 }
 0x8c8   : > { %1962 = vmatmul.mubr.msk.bf16.vlgmr.msra.gmra.mrb[20].mxu0 %vm679_vm1, %v1334_v55 }
 0x8c9   : > { %1981 = vmatprep.mubr.msk.bf16.mxu0 (!%p1847_p8), %vm2462_vm8, %v2461_v21  ;;  %1978 = vmatpush3.bf16.msra.mxu0 (!%p1847_p8), %v2160_v16 }
 0x8ca   : > { %1979 = vmatprep.subr.bf16.mxu0 (!%p1847_p8), %v2461_v21 }
 0x8cd   : > { %1980 = vmatpush3.bf16.msra.mxu0 (!%p1847_p8), %v2161_v22 }
 0x99b   : > { %v1395_v59 = vpop.f32.mrb[20].mxu0 }
 0x99c   : > { %v1396_v60 = vadd.f32 %v1838_v58, %v1395_v59  ;;  %v1963_v61 = vpop.f32.mrb[21].mxu0 }
 0x99d   : > { %v1398_v62 = vpop.f32.mrb[22].mxu0 }
 0x99e   : > { %v1401_v63 = vmax.f32 %v1396_v60, 0.0  ;;  %v1964_v0 = vpop.f32.mrb[23].mxu0 }
 0x9a0   : > { %v1402_v1 = vpack.c.bf16 %v1401_v63, %v1401_v63 }
 0x9a2   : > { %1974 = vmatmul.mubr.msk.bf16.vlgmr.msra.gmra.mrb[20].mxu1 %vm1439_vm7, %v1402_v1 }
 0xa74   : > { %1488 = sbr.rel (%p1847_p8) target bundleno = 3212 (0xc8c), region = 100 }
 0xa75   : > { %v1477_v5 = vpop.f32.mrb[20].mxu1 }
 0xa76   : > { %v1478_v6 = vadd.f32 %v1477_v5, %v1414_v4  ;;  %v1975_v7 = vpop.f32.mrb[21].mxu1 }
 0xa77   : > { %v1480_v11 = vpop.f32.mrb[22].mxu1 }
 0xa78   : > { %v1483_v8 = vadd.f32 %v1478_v6, %v1310_v33  ;;  %v1976_v9 = vpop.f32.mrb[23].mxu1 }
 0xa7a   : > { %1484 = vst.msk [vmem:[#allocation2] sm:$0xff] %vm679_vm1, %v1483_v8  ;;  %v1490_v10 = vsel (!%p1847_p8), %vm679_vm1, %v1483_v8, 0.0 }
 0xa7b   : > { %1491 = vadd.xlane.f32.xlu0 %v1490_v10 }
 0xb08   : > { %v1492_v12 = vpop.xlane.xlu0 %1491 }
 0xb09   : > { %v1493_v13 = vmul.f32 0.03125, %v1492_v12 }
 0xb0b   : > { %v1494_v14 = vsub.f32 %v1483_v8, %v1493_v13 }
 0xb0d   : > { %v1495_v15 = vmul.f32 %v1494_v14, %v1494_v14 }
 0xb0f   : > { %v1496_v19 = vsel %vm679_vm1, %v1495_v15, 0.0 }
 0xb10   : > { %1497 = vadd.xlane.f32.xlu0 %v1496_v19 }
 0xb9d   : > { %v1498_v23 = vpop.xlane.xlu0 %1497 }
 0xb9e   : > { %v1499_v24 = vmul.f32 0.03125, %v1498_v23 }
 0xba0   : > { %v1500_v25 = vadd.f32 1e-06, %v1499_v24 }
 0xba2   : > { %2162 = vrsqrt.f32 %v1500_v25 }
 0xbac   : > { %v2163_v28 = vpop.eup %2162 }
 0xbad   : > { %v1502_v29 = vmul.f32 %v2163_v28, %v1494_v14 }
 0xbaf   : > { %v1507_v31 = vmul.f32 %v1506_v27, %v1502_v29 }
 0xbb1   : > { %v1512_v32 = vadd.f32 %v1511_v30, %v1507_v31 }
 0xbb3   : > { %v1513_v33 = vpack.c.bf16 %v1512_v32, %v1512_v32 }
 0xbb5   : > { %1982 = vmatmul.mubr.msk.bf16.vlgmr.msra.gmra.mrb[0].mxu0 %vm679_vm1, %v1513_v33 }
 0xc88   : > { %v1574_v35 = vpop.f32.mrb[0].mxu0 }
 0xc89   : > { %v1575_v36 = vadd.f32 %v1848_v34, %v1574_v35  ;;  %v1983_v37 = vpop.f32.mrb[1].mxu0 }
 0xc8a   : > { %v1577_v38 = vpop.f32.mrb[2].mxu0 }
 0xc8b   : > { %1580 = vst.msk [vmem:[%s2906_s17] sm:$0xff] %vm679_vm1, %v1575_v36  ;;  %v1984_v18 = vpop.f32.mrb[3].mxu0 }
 0xc8c PF: > { %s3236_s13 = sld [smem:[#allocation23_spill]]  ;;  %s1853_s30 = sshll.u32 %s2432_s15, 7 }
 0xc8d   : > { %s3237_s8 = sld [smem:[#allocation41_spill]]  ;;  %s1595_s20 = sshll.u32 %s2906_s17, 4  ;;  %s1596_s20 = int_to_ptr.vmem [resolvable:$true] %s1595_s20 }
 0xc8e   : > { %s1582_s12 = scalar_lea.sflag [#allocation5], %s2849_s6  ;;  %s2310_s10 = scalar_lea.vmem %s1596_s20, 128 }
 0xc8f   : > { %p2311_p12 = scmp.ne.s32.totalorder %s1596_s20, %s2310_s10  ;;  %s2463_s16 = smov [#allocation11]  }
 0xc90   : > { %s2314_s0 = sshll.u32 %s2463_s16, 4  ;;  %s2315_s0 = int_to_ptr.vmem [resolvable:$false] %s2314_s0 }
 0xc91   : > { %s2316_s9 = scalar_lea.vmem %s2315_s0, 256  ;;  %p2317_p2 = scmp.lt.s32.totalorder %s1596_s20, %s2315_s0 }
 0xc92   : > { %p3238_p1 = scmp.ne.s32.totalorder %s3236_s13, 0  ;;  %p2318_p4 = scmp.lt.s32.totalorder %s2316_s9, %s2310_s10 }
 0xc93   : > { %s3061_s21 = scalar_lea.hbm %s3237_s8, %s1853_s30 }
 0xc94   : > { %p2312_p5 = pnand %p2311_p12, %p3238_p1  ;;  %p2319_p7 = por %p2318_p4, %p2317_p2 }
 0xc96   : > { %p2313_p10 = pneg %p2312_p5 }
 0xc98   : > { %p2320_p13 = pnand %p2319_p7, %p2313_p10 }
 0xc9a   : > { %2323 = shalt.err (!%p2320_p13)
}
 0xc9b   : > { %s2324_s15 = scalar_lea.hbm %s3061_s21, 128  ;;  %s2328_s22 = scalar_lea.hbm %s3237_s8, 256 }
 0xc9c   : > { %p2325_p9 = scmp.ne.s32.totalorder %s3061_s21, %s2324_s15  ;;  %p2329_p3 = scmp.lt.u32.totalorder %s3061_s21, %s3237_s8 }
 0xc9d   : > { %p2330_p6 = scmp.lt.u32.totalorder %s2328_s22, %s2324_s15  ;;  %p2332_p12 = scmp.lt.u32.totalorder %s2324_s15, %s3061_s21 }
 0xc9e   : > { %p2326_p0 = pnand %p2325_p9, %p3238_p1 }
 0xc9f   : > { %p2331_p8 = por %p2330_p6, %p2329_p3 }
 0xca0   : > { %p2327_p11 = pneg %p2326_p0 }
 0xca1   : > { %p2333_p5 = por %p2332_p12, %p2331_p8 }
 0xca3   : > { %p2334_p10 = pnand %p2333_p5, %p2327_p11 }
 0xca5   : > { %2337 = shalt.err (!%p2334_p10)
}
 0xca6   : > { %1999 = dma.vmem_to_hbm [thread:$0]  (%p3238_p1), %s1596_s20, 128, %s3061_s21, %s1582_s12  }
 0xca7 PF: > { %s3239_s23 = sld [smem:[#allocation21_spill]]  ;;  %s3240_s28 = sld [smem:[#allocation17_spill]] }
 0xca8   : > { %s3241_s7 = sld [smem:[#allocation22_spill]] }
 0xcad   : > { %p2027_p2 = scmp.ge.s32.totalorder %s3239_s23, 2  ;;  %s1607_s25 = sand.u32 1, %s3240_s28  }
 0xcae   : > { %p3242_p4 = scmp.ne.s32.totalorder %s3241_s7, 0  ;;  %s1608_s14 = scalar_lea.sflag [#allocation5], %s1607_s25 }
 0xcb0   : > { %p2019_p7 = pnand %p2027_p2, %p3242_p4 }
 0xcb2   : > { %2399 = dma.done.wait (!%p2019_p7), %s1608_s14, 128  }
 0xcb3   : > { %2401 = vsyncadd (!%p2019_p7), %s1608_s14, 4294967168  ;;  %s30_s18 = sadd.s32 1, %s3239_s23   ;;  %s3243_s1 = sld [smem:[#allocation26_spill]] }
 0xcb4   : > { %p27_p13 = scmp.ge.s32.totalorder %s30_s18, 6   ;;  %s3244_s2 = sld [smem:[#allocation18_spill]] }
 0xcb5   : > { %s3245_s30 = sld [smem:[#allocation27_spill]]  ;;  %s3246_s14 = sld [smem:[#allocation19_spill]] }
 0xcb6   : > { %s3247_s15 = sld [smem:[#allocation20_spill]]  ;;  %s3248_s16 = sld [smem:[#allocation24_spill]] }
 0xcb7   : > { %s3249_s17 = sld [smem:[#allocation25_spill]]  ;;  %s3250_s25 = smov %s2408_s26 }
 0xcb8   : > { %s3251_s26 = smov %s2412_s27  ;;  %s3253_s28 = smov %s2420_s29 }
 0xcb9   : > { %s3252_s27 = smov %s3243_s1  ;;  %29 = sbr.rel (!%p27_p13) target bundleno = 25 (0x19), region = 173 }
 0xcba   : > { %s3254_s29 = smov %s3244_s2 }
 0xcc0   :  { %1613 = vsyncpa [#allocation4], 1 }
 0xcc1   :  { %1615 = vsyncpa [#allocation4 + $0x1], 1 }
 0xcc2   :  { %1616 = vsyncpa [#allocation7], 1 }
 0xcc3   :  { %1617 = vsyncpa [#allocation5], 1 }
 0xcc4   :  { %1619 = vsyncpa [#allocation5 + $0x1], 1 }

</bundles_post_ra>
